<compile_context>
chip_gen: v7x
topology: tpu7x:2x2x1
jax: 0.10.0
libtpu: 0.0.40
codegen_flags: <defaults>
</compile_context>

<pallas_src>
import jax
import jax.numpy as jnp
from jax.experimental import pallas as pl
from jax.experimental.pallas import tpu as pltpu

LSTM_SIZE = 256          # self.LSTM_size in the PyTorch module
NUM_STEPS = 4            # A, B, C, D


def lstm_kernel(a_ref, b_ref, c_ref, d_ref,
                wfeat_ref, whh_ref, sbias_ref, wout_ref, bout_ref, out_ref):
    H = LSTM_SIZE
    B = out_ref.shape[0]

    # --- Stack the 4 per-step feature blocks on sublanes (B == 8 -> aligned)
    #     and compute all input-side gates in one MXU matmul, off the h-chain.
    x = jnp.concatenate(
        [a_ref[...], b_ref[...], c_ref[...], d_ref[...]], axis=0)      # (4B, feat)
    gx = jnp.dot(x.astype(jnp.bfloat16), wfeat_ref[...],
                 preferred_element_type=jnp.float32)                   # (4B, 4H)
    # Per-step input gates with (bias + tag-row) already folded in.
    gx_t = [gx[t * B:(t + 1) * B, :] + sbias_ref[t:t + 1, :]
            for t in range(NUM_STEPS)]                                 # 4 x (B, 4H)

    whh = whh_ref[...]                                                 # (H, 4H) bf16

    # --- Step 0 specialized: h0 = c0 = 0  =>  gates = gx_0, c1 = i*g.
    gates0 = gx_t[0]
    i_g = jax.nn.sigmoid(gates0[:, 0 * H:1 * H])
    g_g = jnp.tanh(gates0[:, 2 * H:3 * H])
    o_g = jax.nn.sigmoid(gates0[:, 3 * H:4 * H])
    c = i_g * g_g
    h = o_g * jnp.tanh(c)

    # --- Steps 1..3: only h @ W_hh sits on the serial chain.
    for t in range(1, NUM_STEPS):
        gates = gx_t[t] + jnp.dot(h.astype(jnp.bfloat16), whh,
                                  preferred_element_type=jnp.float32)  # (B, 4H)
        i_g = jax.nn.sigmoid(gates[:, 0 * H:1 * H])
        f_g = jax.nn.sigmoid(gates[:, 1 * H:2 * H])
        g_g = jnp.tanh(gates[:, 2 * H:3 * H])
        o_g = jax.nn.sigmoid(gates[:, 3 * H:4 * H])
        c = f_g * c + i_g * g_g
        h = o_g * jnp.tanh(c)

    # --- Score head: N=1 Linear as VPU multiply + lane reduction (no MXU).
    out_ref[...] = (jnp.sum(h * wout_ref[...], axis=-1, keepdims=True)
                    + bout_ref[...])


def lstm_score(A, B_in, C, D, kernel_params):
    """Reproduces LSTM.forward(A, B, C, D): returns (batch, 1) scores."""
    batch = A.shape[0]
    wfeat_bf16, whh_bf16, step_bias, wout_row, bout = kernel_params
    vmem = pl.BlockSpec(memory_space=pltpu.MemorySpace.VMEM)

    return pl.pallas_call(
        lstm_kernel,
        out_shape=jax.ShapeDtypeStruct((batch, 1), jnp.float32),
        in_specs=[vmem] * 9,
        out_specs=vmem,
    )(A, B_in, C, D, wfeat_bf16, whh_bf16, step_bias, wout_row, bout)


def init_params(key, in_dim):
    """Deterministic init matching nn.LSTMCell / nn.Linear shapes (transposed)."""
    H = LSTM_SIZE
    k = 1.0 / jnp.sqrt(jnp.float32(H))
    keys = jax.random.split(key, 6)
    # PyTorch stores W_ih as (4H, in_dim); we keep the transposed layout.
    wih = jax.random.uniform(keys[0], (in_dim, 4 * H), jnp.float32, -k, k)
    whh = jax.random.uniform(keys[1], (H, 4 * H), jnp.float32, -k, k)
    b_ih = jax.random.uniform(keys[2], (1, 4 * H), jnp.float32, -k, k)
    b_hh = jax.random.uniform(keys[3], (1, 4 * H), jnp.float32, -k, k)
    bias = b_ih + b_hh
    wout = jax.random.uniform(keys[4], (H, 1), jnp.float32, -k, k)
    bout = jax.random.uniform(keys[5], (1, 1), jnp.float32, -k, k)
    return wih, whh, bias, wout, bout


def prepare_kernel_params(params):
    """Fold tag rows into per-step bias, split W_ih, cast weights to bf16."""
    wih, whh, bias, wout, bout = params
    w_tag = wih[:NUM_STEPS, :]                      # (4, 4H)  one-hot tag rows
    w_feat = wih[NUM_STEPS:, :]                     # (feat, 4H)
    step_bias = bias + w_tag                        # (4, 4H)  f32
    wfeat_bf16 = w_feat.astype(jnp.bfloat16)
    whh_bf16 = whh.astype(jnp.bfloat16)
    wout_row = wout.reshape(1, LSTM_SIZE)           # (1, H)   f32
    return wfeat_bf16, whh_bf16, step_bias, wout_row, bout


def reference_score(A, B_in, C, D, kernel_params):
    """Pure-JAX reference using the same bf16 weights / f32 accumulation."""
    wfeat_bf16, whh_bf16, step_bias, wout_row, bout = kernel_params
    H = LSTM_SIZE
    batch = A.shape[0]
    h = jnp.zeros((batch, H), jnp.float32)
    c = jnp.zeros((batch, H), jnp.float32)
    for t, feat in enumerate((A, B_in, C, D)):
        gx = jnp.dot(feat.astype(jnp.bfloat16), wfeat_bf16,
                     preferred_element_type=jnp.float32) + step_bias[t:t + 1, :]
        gates = gx + jnp.dot(h.astype(jnp.bfloat16), whh_bf16,
                             preferred_element_type=jnp.float32)
        i_g = jax.nn.sigmoid(gates[:, 0 * H:1 * H])
        f_g = jax.nn.sigmoid(gates[:, 1 * H:2 * H])
        g_g = jnp.tanh(gates[:, 2 * H:3 * H])
        o_g = jax.nn.sigmoid(gates[:, 3 * H:4 * H])
        c = f_g * c + i_g * g_g
        h = o_g * jnp.tanh(c)
    return jnp.sum(h * wout_row, axis=-1, keepdims=True) + bout


if __name__ == "__main__":
    batch = 8
    feat_dim = 32                       # per-input feature size
    in_dim = feat_dim + NUM_STEPS       # LSTMCell input dim (tag + features)

    key = jax.random.PRNGKey(0)
    k_params, kA, kB, kC, kD = jax.random.split(key, 5)

    params = init_params(k_params, in_dim)
    kernel_params = prepare_kernel_params(params)

    A = jax.random.normal(kA, (batch, feat_dim), jnp.float32)
    B_in = jax.random.normal(kB, (batch, feat_dim), jnp.float32)
    C = jax.random.normal(kC, (batch, feat_dim), jnp.float32)
    D = jax.random.normal(kD, (batch, feat_dim), jnp.float32)

    score = lstm_score(A, B_in, C, D, kernel_params)
    jax.block_until_ready(score)

    assert score.shape == (batch, 1) and score.dtype == jnp.float32

    ref = reference_score(A, B_in, C, D, kernel_params)
    jax.block_until_ready(ref)
    max_err = float(jnp.max(jnp.abs(score - ref)))
    assert max_err < 1e-3, f"max abs error vs reference: {max_err}"

    print("KERNEL_OK")
</pallas_src>

<mosaic_0001>
module attributes {stable_mosaic.version = 11 : i64} {
  func.func @lstm_kernel(%arg0: memref<8x32xf32, #tpu.memory_space<vmem>>, %arg1: memref<8x32xf32, #tpu.memory_space<vmem>>, %arg2: memref<8x32xf32, #tpu.memory_space<vmem>>, %arg3: memref<8x32xf32, #tpu.memory_space<vmem>>, %arg4: memref<32x1024xbf16, #tpu.memory_space<vmem>>, %arg5: memref<256x1024xbf16, #tpu.memory_space<vmem>>, %arg6: memref<4x1024xf32, #tpu.memory_space<vmem>>, %arg7: memref<1x256xf32, #tpu.memory_space<vmem>>, %arg8: memref<1x1xf32, #tpu.memory_space<vmem>>, %arg9: memref<8x1xf32, #tpu.memory_space<vmem>>) attributes {dimension_semantics = [], scalar_prefetch = 0 : i64, scratch_operands = 0 : i64, tpu.core_type = #tpu.core_type<tc>} {
    %c0 = arith.constant 0 : index
    %c0_0 = arith.constant 0 : index
    %0 = vector.load %arg0[%c0, %c0_0] : memref<8x32xf32, #tpu.memory_space<vmem>>, vector<8x32xf32>
    %c0_1 = arith.constant 0 : index
    %c0_2 = arith.constant 0 : index
    %1 = vector.load %arg1[%c0_1, %c0_2] : memref<8x32xf32, #tpu.memory_space<vmem>>, vector<8x32xf32>
    %c0_3 = arith.constant 0 : index
    %c0_4 = arith.constant 0 : index
    %2 = vector.load %arg2[%c0_3, %c0_4] : memref<8x32xf32, #tpu.memory_space<vmem>>, vector<8x32xf32>
    %c0_5 = arith.constant 0 : index
    %c0_6 = arith.constant 0 : index
    %3 = vector.load %arg3[%c0_5, %c0_6] : memref<8x32xf32, #tpu.memory_space<vmem>>, vector<8x32xf32>
    %4 = tpu.concatenate %0, %1, %2, %3 in 0 : vector<8x32xf32>, vector<8x32xf32>, vector<8x32xf32>, vector<8x32xf32> -> vector<32x32xf32>
    %5 = arith.truncf %4 : vector<32x32xf32> to vector<32x32xbf16>
    %c0_7 = arith.constant 0 : index
    %c0_8 = arith.constant 0 : index
    %6 = vector.load %arg4[%c0_7, %c0_8] : memref<32x1024xbf16, #tpu.memory_space<vmem>>, vector<32x1024xbf16>
    %cst = arith.constant dense<0.000000e+00> : vector<32x1024xf32>
    %7 = tpu.matmul %5, %6, %cst {dimension_numbers = #tpu.dot_dimension_numbers<[1], [0], [0], [1], [0, 0, 1, 1], [], []>} : vector<32x32xbf16>, vector<32x1024xbf16>, vector<32x1024xf32> -> vector<32x1024xf32>
    %8 = vector.extract_strided_slice %7 {offsets = [0, 0], sizes = [8, 1024], strides = [1, 1]} : vector<32x1024xf32> to vector<8x1024xf32>
    %c0_9 = arith.constant 0 : index
    %c0_10 = arith.constant 0 : index
    %9 = vector.load %arg6[%c0_9, %c0_10] : memref<4x1024xf32, #tpu.memory_space<vmem>>, vector<1x1024xf32>
    %10 = vector.broadcast %9 : vector<1x1024xf32> to vector<8x1024xf32>
    %11 = arith.addf %8, %10 : vector<8x1024xf32>
    %12 = vector.extract_strided_slice %7 {offsets = [8, 0], sizes = [8, 1024], strides = [1, 1]} : vector<32x1024xf32> to vector<8x1024xf32>
    %c1 = arith.constant 1 : index
    %c0_11 = arith.constant 0 : index
    %13 = vector.load %arg6[%c1, %c0_11] : memref<4x1024xf32, #tpu.memory_space<vmem>>, vector<1x1024xf32>
    %14 = vector.broadcast %13 : vector<1x1024xf32> to vector<8x1024xf32>
    %15 = arith.addf %12, %14 : vector<8x1024xf32>
    %16 = vector.extract_strided_slice %7 {offsets = [16, 0], sizes = [8, 1024], strides = [1, 1]} : vector<32x1024xf32> to vector<8x1024xf32>
    %c2 = arith.constant 2 : index
    %c0_12 = arith.constant 0 : index
    %17 = vector.load %arg6[%c2, %c0_12] : memref<4x1024xf32, #tpu.memory_space<vmem>>, vector<1x1024xf32>
    %18 = vector.broadcast %17 : vector<1x1024xf32> to vector<8x1024xf32>
    %19 = arith.addf %16, %18 : vector<8x1024xf32>
    %20 = vector.extract_strided_slice %7 {offsets = [24, 0], sizes = [8, 1024], strides = [1, 1]} : vector<32x1024xf32> to vector<8x1024xf32>
    %c3 = arith.constant 3 : index
    %c0_13 = arith.constant 0 : index
    %21 = vector.load %arg6[%c3, %c0_13] : memref<4x1024xf32, #tpu.memory_space<vmem>>, vector<1x1024xf32>
    %22 = vector.broadcast %21 : vector<1x1024xf32> to vector<8x1024xf32>
    %23 = arith.addf %20, %22 : vector<8x1024xf32>
    %c0_14 = arith.constant 0 : index
    %c0_15 = arith.constant 0 : index
    %24 = vector.load %arg5[%c0_14, %c0_15] : memref<256x1024xbf16, #tpu.memory_space<vmem>>, vector<256x1024xbf16>
    %25 = vector.extract_strided_slice %11 {offsets = [0, 0], sizes = [8, 256], strides = [1, 1]} : vector<8x1024xf32> to vector<8x256xf32>
    %26 = arith.negf %25 : vector<8x256xf32>
    %27 = math.exp %26 : vector<8x256xf32>
    %cst_16 = arith.constant 1.000000e+00 : f32
    %28 = vector.broadcast %cst_16 : f32 to vector<8x256xf32>
    %29 = arith.addf %28, %27 : vector<8x256xf32>
    %30 = arith.divf %28, %29 : vector<8x256xf32>
    %31 = vector.extract_strided_slice %11 {offsets = [0, 512], sizes = [8, 256], strides = [1, 1]} : vector<8x1024xf32> to vector<8x256xf32>
    %32 = math.tanh %31 : vector<8x256xf32>
    %33 = vector.extract_strided_slice %11 {offsets = [0, 768], sizes = [8, 256], strides = [1, 1]} : vector<8x1024xf32> to vector<8x256xf32>
    %34 = arith.negf %33 : vector<8x256xf32>
    %35 = math.exp %34 : vector<8x256xf32>
    %cst_17 = arith.constant 1.000000e+00 : f32
    %36 = vector.broadcast %cst_17 : f32 to vector<8x256xf32>
    %37 = arith.addf %36, %35 : vector<8x256xf32>
    %38 = arith.divf %36, %37 : vector<8x256xf32>
    %39 = arith.mulf %30, %32 : vector<8x256xf32>
    %40 = math.tanh %39 : vector<8x256xf32>
    %41 = arith.mulf %38, %40 : vector<8x256xf32>
    %42 = arith.truncf %41 : vector<8x256xf32> to vector<8x256xbf16>
    %cst_18 = arith.constant dense<0.000000e+00> : vector<8x1024xf32>
    %43 = tpu.matmul %42, %24, %cst_18 {dimension_numbers = #tpu.dot_dimension_numbers<[1], [0], [0], [1], [0, 0, 1, 1], [], []>} : vector<8x256xbf16>, vector<256x1024xbf16>, vector<8x1024xf32> -> vector<8x1024xf32>
    %44 = arith.addf %15, %43 : vector<8x1024xf32>
    %45 = vector.extract_strided_slice %44 {offsets = [0, 0], sizes = [8, 256], strides = [1, 1]} : vector<8x1024xf32> to vector<8x256xf32>
    %46 = arith.negf %45 : vector<8x256xf32>
    %47 = math.exp %46 : vector<8x256xf32>
    %cst_19 = arith.constant 1.000000e+00 : f32
    %48 = vector.broadcast %cst_19 : f32 to vector<8x256xf32>
    %49 = arith.addf %48, %47 : vector<8x256xf32>
    %50 = arith.divf %48, %49 : vector<8x256xf32>
    %51 = vector.extract_strided_slice %44 {offsets = [0, 256], sizes = [8, 256], strides = [1, 1]} : vector<8x1024xf32> to vector<8x256xf32>
    %52 = arith.negf %51 : vector<8x256xf32>
    %53 = math.exp %52 : vector<8x256xf32>
    %cst_20 = arith.constant 1.000000e+00 : f32
    %54 = vector.broadcast %cst_20 : f32 to vector<8x256xf32>
    %55 = arith.addf %54, %53 : vector<8x256xf32>
    %56 = arith.divf %54, %55 : vector<8x256xf32>
    %57 = vector.extract_strided_slice %44 {offsets = [0, 512], sizes = [8, 256], strides = [1, 1]} : vector<8x1024xf32> to vector<8x256xf32>
    %58 = math.tanh %57 : vector<8x256xf32>
    %59 = vector.extract_strided_slice %44 {offsets = [0, 768], sizes = [8, 256], strides = [1, 1]} : vector<8x1024xf32> to vector<8x256xf32>
    %60 = arith.negf %59 : vector<8x256xf32>
    %61 = math.exp %60 : vector<8x256xf32>
    %cst_21 = arith.constant 1.000000e+00 : f32
    %62 = vector.broadcast %cst_21 : f32 to vector<8x256xf32>
    %63 = arith.addf %62, %61 : vector<8x256xf32>
    %64 = arith.divf %62, %63 : vector<8x256xf32>
    %65 = arith.mulf %56, %39 : vector<8x256xf32>
    %66 = arith.mulf %50, %58 : vector<8x256xf32>
    %67 = arith.addf %65, %66 : vector<8x256xf32>
    %68 = math.tanh %67 : vector<8x256xf32>
    %69 = arith.mulf %64, %68 : vector<8x256xf32>
    %70 = arith.truncf %69 : vector<8x256xf32> to vector<8x256xbf16>
    %cst_22 = arith.constant dense<0.000000e+00> : vector<8x1024xf32>
    %71 = tpu.matmul %70, %24, %cst_22 {dimension_numbers = #tpu.dot_dimension_numbers<[1], [0], [0], [1], [0, 0, 1, 1], [], []>} : vector<8x256xbf16>, vector<256x1024xbf16>, vector<8x1024xf32> -> vector<8x1024xf32>
    %72 = arith.addf %19, %71 : vector<8x1024xf32>
    %73 = vector.extract_strided_slice %72 {offsets = [0, 0], sizes = [8, 256], strides = [1, 1]} : vector<8x1024xf32> to vector<8x256xf32>
    %74 = arith.negf %73 : vector<8x256xf32>
    %75 = math.exp %74 : vector<8x256xf32>
    %cst_23 = arith.constant 1.000000e+00 : f32
    %76 = vector.broadcast %cst_23 : f32 to vector<8x256xf32>
    %77 = arith.addf %76, %75 : vector<8x256xf32>
    %78 = arith.divf %76, %77 : vector<8x256xf32>
    %79 = vector.extract_strided_slice %72 {offsets = [0, 256], sizes = [8, 256], strides = [1, 1]} : vector<8x1024xf32> to vector<8x256xf32>
    %80 = arith.negf %79 : vector<8x256xf32>
    %81 = math.exp %80 : vector<8x256xf32>
    %cst_24 = arith.constant 1.000000e+00 : f32
    %82 = vector.broadcast %cst_24 : f32 to vector<8x256xf32>
    %83 = arith.addf %82, %81 : vector<8x256xf32>
    %84 = arith.divf %82, %83 : vector<8x256xf32>
    %85 = vector.extract_strided_slice %72 {offsets = [0, 512], sizes = [8, 256], strides = [1, 1]} : vector<8x1024xf32> to vector<8x256xf32>
    %86 = math.tanh %85 : vector<8x256xf32>
    %87 = vector.extract_strided_slice %72 {offsets = [0, 768], sizes = [8, 256], strides = [1, 1]} : vector<8x1024xf32> to vector<8x256xf32>
    %88 = arith.negf %87 : vector<8x256xf32>
    %89 = math.exp %88 : vector<8x256xf32>
    %cst_25 = arith.constant 1.000000e+00 : f32
    %90 = vector.broadcast %cst_25 : f32 to vector<8x256xf32>
    %91 = arith.addf %90, %89 : vector<8x256xf32>
    %92 = arith.divf %90, %91 : vector<8x256xf32>
    %93 = arith.mulf %84, %67 : vector<8x256xf32>
    %94 = arith.mulf %78, %86 : vector<8x256xf32>
    %95 = arith.addf %93, %94 : vector<8x256xf32>
    %96 = math.tanh %95 : vector<8x256xf32>
    %97 = arith.mulf %92, %96 : vector<8x256xf32>
    %98 = arith.truncf %97 : vector<8x256xf32> to vector<8x256xbf16>
    %cst_26 = arith.constant dense<0.000000e+00> : vector<8x1024xf32>
    %99 = tpu.matmul %98, %24, %cst_26 {dimension_numbers = #tpu.dot_dimension_numbers<[1], [0], [0], [1], [0, 0, 1, 1], [], []>} : vector<8x256xbf16>, vector<256x1024xbf16>, vector<8x1024xf32> -> vector<8x1024xf32>
    %100 = arith.addf %23, %99 : vector<8x1024xf32>
    %101 = vector.extract_strided_slice %100 {offsets = [0, 0], sizes = [8, 256], strides = [1, 1]} : vector<8x1024xf32> to vector<8x256xf32>
    %102 = arith.negf %101 : vector<8x256xf32>
    %103 = math.exp %102 : vector<8x256xf32>
    %cst_27 = arith.constant 1.000000e+00 : f32
    %104 = vector.broadcast %cst_27 : f32 to vector<8x256xf32>
    %105 = arith.addf %104, %103 : vector<8x256xf32>
    %106 = arith.divf %104, %105 : vector<8x256xf32>
    %107 = vector.extract_strided_slice %100 {offsets = [0, 256], sizes = [8, 256], strides = [1, 1]} : vector<8x1024xf32> to vector<8x256xf32>
    %108 = arith.negf %107 : vector<8x256xf32>
    %109 = math.exp %108 : vector<8x256xf32>
    %cst_28 = arith.constant 1.000000e+00 : f32
    %110 = vector.broadcast %cst_28 : f32 to vector<8x256xf32>
    %111 = arith.addf %110, %109 : vector<8x256xf32>
    %112 = arith.divf %110, %111 : vector<8x256xf32>
    %113 = vector.extract_strided_slice %100 {offsets = [0, 512], sizes = [8, 256], strides = [1, 1]} : vector<8x1024xf32> to vector<8x256xf32>
    %114 = math.tanh %113 : vector<8x256xf32>
    %115 = vector.extract_strided_slice %100 {offsets = [0, 768], sizes = [8, 256], strides = [1, 1]} : vector<8x1024xf32> to vector<8x256xf32>
    %116 = arith.negf %115 : vector<8x256xf32>
    %117 = math.exp %116 : vector<8x256xf32>
    %cst_29 = arith.constant 1.000000e+00 : f32
    %118 = vector.broadcast %cst_29 : f32 to vector<8x256xf32>
    %119 = arith.addf %118, %117 : vector<8x256xf32>
    %120 = arith.divf %118, %119 : vector<8x256xf32>
    %121 = arith.mulf %112, %95 : vector<8x256xf32>
    %122 = arith.mulf %106, %114 : vector<8x256xf32>
    %123 = arith.addf %121, %122 : vector<8x256xf32>
    %124 = math.tanh %123 : vector<8x256xf32>
    %125 = arith.mulf %120, %124 : vector<8x256xf32>
    %c0_30 = arith.constant 0 : index
    %c0_31 = arith.constant 0 : index
    %126 = vector.load %arg7[%c0_30, %c0_31] : memref<1x256xf32, #tpu.memory_space<vmem>>, vector<1x256xf32>
    %127 = vector.broadcast %126 : vector<1x256xf32> to vector<8x256xf32>
    %128 = arith.mulf %125, %127 : vector<8x256xf32>
    %cst_32 = arith.constant dense<0.000000e+00> : vector<8xf32>
    %129 = vector.multi_reduction <add>, %128, %cst_32 [1] : vector<8x256xf32> to vector<8xf32>
    %130 = vector.shape_cast %129 : vector<8xf32> to vector<8x1xf32>
    %c0_33 = arith.constant 0 : index
    %c0_34 = arith.constant 0 : index
    %131 = vector.load %arg8[%c0_33, %c0_34] : memref<1x1xf32, #tpu.memory_space<vmem>>, vector<1x1xf32>
    %132 = vector.broadcast %131 : vector<1x1xf32> to vector<8x1xf32>
    %133 = arith.addf %130, %132 : vector<8x1xf32>
    %c0_35 = arith.constant 0 : index
    %c0_36 = arith.constant 0 : index
    %134 = vector.load %arg9[%c0_35, %c0_36] : memref<8x1xf32, #tpu.memory_space<vmem>>, vector<8x1xf32>
    tpu.vector_store %arg9[%c0_35, %c0_36], %133 {strides = array<i32>} : memref<8x1xf32, #tpu.memory_space<vmem>>, vector<8x1xf32>,
    return
  }
}

</mosaic_0001>

<bundles_post_ra>
// kernel: tpu_custom_call.1
= control target key start
LH: loop header
LB: loop body
LE: loop exit
PB: predicated region body
PF: predicated region fallthrough
CT: control target
= control target key end

     0   :  { %s3548_s0 = inlined_call_operand.hbm [shape: f32[8,32], index: 0, kind: input, shape index: {}]   ;;  %s3549_s1 = inlined_call_operand.hbm [shape: f32[8,32], index: 1, kind: input, shape index: {}]   ;;  %s3550_s2 = inlined_call_operand.vmem [shape: f32[8,32], index: 2, kind: input, shape index: {}]   ;;  %s3551_s3 = inlined_call_operand.hbm [shape: f32[8,32], index: 3, kind: input, shape index: {}]   ;;  %s3552_s4 = inlined_call_operand.hbm [shape: bf16[32,1024], index: 4, kind: input, shape index: {}]   ;;  %s3553_s5 = inlined_call_operand.hbm [shape: bf16[256,1024], index: 5, kind: input, shape index: {}]   ;;  %s3554_s6 = inlined_call_operand.hbm [shape: f32[4,1024], index: 6, kind: input, shape index: {}]   ;;  %s3555_s7 = inlined_call_operand.vmem [shape: f32[1,256], index: 7, kind: input, shape index: {}]   ;;  %s3556_s8 = inlined_call_operand.<no memory space> [shape: f32[1,1], index: 8, kind: input, shape index: {}]   ;;  %s3557_s9 = inlined_call_operand.vmem [shape: f32[8,1], index: 9, kind: output, shape index: {}]  }
   0x1   :  { %v14_v0 = vstv %s3556_s8 }
   0x2   :  { %15 = vst [vmem:[#allocation2] sm:$0x1] %v14_v0 }
   0x3   :  { %16 = vsyncpa [#allocation4], 0 }
   0x4   :  { %17 = vsyncpa [#allocation6], 0 }
   0x5   :  { %18 = vsyncpa [#allocation9], 0 }
   0x6   :  { %19 = vsyncpa [#allocation12], 0  ;;  %s2566_s11 = smov [#allocation5]   ;;  %s2567_s13 = smov [#allocation8]  }
   0x7   :  { %s36_s12 = sshll.u32 %s2566_s11, 4  ;;  %s57_s14 = sshll.u32 %s2567_s13, 4  ;;  %s37_s12 = int_to_ptr.vmem [resolvable:$true] %s36_s12  ;;  %s2628_s14 = int_to_ptr.vmem [resolvable:$true] %s57_s14 }
   0x8   :  { %s2426_s17 = scalar_lea.hbm %s3549_s1, 128 }
   0x9   :  { %p2427_p0 = scmp.ne.s32.totalorder %s3549_s1, %s2426_s17  ;;  %p2430_p1 = scmp.lt.u32.totalorder %s2426_s17, %s3549_s1 }
   0xb   :  { %p2432_p2 = pnand %p2430_p1, %p2427_p0 }
   0xd   :  { %2435 = shalt.err (!%p2432_p2)
}
   0xe   :  { %s2436_s21 = scalar_lea.vmem %s37_s12, 128  ;;  %p2441_p4 = scmp.lt.s32.totalorder %s37_s12, %s37_s12 }
   0xf   :  { %p2437_p3 = scmp.ne.s32.totalorder %s37_s12, %s2436_s21  ;;  %p2442_p5 = scmp.lt.s32.totalorder %s2436_s21, %s2436_s21 }
  0x11   :  { %p2443_p6 = por %p2442_p5, %p2441_p4 }
  0x13   :  { %p2444_p7 = pnand %p2443_p6, %p2437_p3 }
  0x15   :  { %2447 = shalt.err (!%p2444_p7)
}
  0x16   :  { %39 = dma.hbm_to_vmem [thread:$0]  %s3549_s1, 128, %s37_s12, [#allocation6]  }
  0x17   :  { %s2448_s26 = scalar_lea.hbm %s3552_s4, 2048 }
  0x18   :  { %p2449_p8 = scmp.ne.s32.totalorder %s3552_s4, %s2448_s26  ;;  %p2452_p9 = scmp.lt.u32.totalorder %s2448_s26, %s3552_s4 }
  0x1a   :  { %p2454_p10 = pnand %p2452_p9, %p2449_p8 }
  0x1c   :  { %2457 = shalt.err (!%p2454_p10)
}
  0x1d   :  { %s2458_s10 = scalar_lea.vmem %s2628_s14, 2048  ;;  %p2463_p12 = scmp.lt.s32.totalorder %s2628_s14, %s2628_s14 }
  0x1e   :  { %p2459_p11 = scmp.ne.s32.totalorder %s2628_s14, %s2458_s10  ;;  %p2464_p13 = scmp.lt.s32.totalorder %s2458_s10, %s2458_s10 }
  0x20   :  { %p2465_p0 = por %p2464_p13, %p2463_p12 }
  0x22   :  { %p2466_p1 = pnand %p2465_p0, %p2459_p11 }
  0x24   :  { %2469 = shalt.err (!%p2466_p1)
}
  0x25   :  { %s2568_s1 = smov 512   ;;  %s2569_s11 = smov 32  }
  0x26   :  { %63 = dma.hbm_to_vmem [thread:$0]  %s3552_s4, 2048, %s2628_s14, [#allocation9], %s2568_s1, %s2568_s1, %s2569_s11  }
  0x27   :  { %s2570_s15 = smov [#allocation3]   ;;  %s2571_s17 = smov [#allocation7]  }
  0x28   :  { %s26_s16 = sshll.u32 %s2570_s15, 4  ;;  %s48_s18 = sshll.u32 %s2571_s17, 4  ;;  %s27_s16 = int_to_ptr.vmem [resolvable:$true] %s26_s16  ;;  %s49_s18 = int_to_ptr.vmem [resolvable:$true] %s48_s18 }
  0x29   :  { %s2470_s20 = scalar_lea.hbm %s3548_s0, 128 }
  0x2a   :  { %p2471_p2 = scmp.ne.s32.totalorder %s3548_s0, %s2470_s20  ;;  %p2474_p3 = scmp.lt.u32.totalorder %s2470_s20, %s3548_s0 }
  0x2c   :  { %p2476_p4 = pnand %p2474_p3, %p2471_p2 }
  0x2e   :  { %2479 = shalt.err (!%p2476_p4)
}
  0x2f   :  { %s2480_s4 = scalar_lea.vmem %s27_s16, 128  ;;  %p2485_p6 = scmp.lt.s32.totalorder %s27_s16, %s27_s16 }
  0x30   :  { %p2481_p5 = scmp.ne.s32.totalorder %s27_s16, %s2480_s4  ;;  %p2486_p7 = scmp.lt.s32.totalorder %s2480_s4, %s2480_s4 }
  0x32   :  { %p2487_p8 = por %p2486_p7, %p2485_p6 }
  0x34   :  { %p2488_p9 = pnand %p2487_p8, %p2481_p5 }
  0x36   :  { %2491 = shalt.err (!%p2488_p9)
}
  0x37   :  { %29 = dma.hbm_to_vmem [thread:$0]  %s3548_s0, 128, %s27_s16, [#allocation4]  }
  0x38   :  { %s2492_s28 = scalar_lea.hbm %s3551_s3, 128 }
  0x39   :  { %p2493_p10 = scmp.ne.s32.totalorder %s3551_s3, %s2492_s28  ;;  %p2496_p11 = scmp.lt.u32.totalorder %s2492_s28, %s3551_s3 }
  0x3b   :  { %p2498_p12 = pnand %p2496_p11, %p2493_p10 }
  0x3d   :  { %2501 = shalt.err (!%p2498_p12)
}
  0x3e   :  { %s2502_s13 = scalar_lea.vmem %s49_s18, 128  ;;  %p2507_p0 = scmp.lt.s32.totalorder %s49_s18, %s49_s18 }
  0x3f   :  { %p2503_p13 = scmp.ne.s32.totalorder %s49_s18, %s2502_s13  ;;  %p2508_p1 = scmp.lt.s32.totalorder %s2502_s13, %s2502_s13 }
  0x41   :  { %p2509_p2 = por %p2508_p1, %p2507_p0 }
  0x43   :  { %p2510_p3 = pnand %p2509_p2, %p2503_p13 }
  0x45   :  { %2513 = shalt.err (!%p2510_p3)
}
  0x46   :  { %51 = dma.hbm_to_vmem [thread:$0]  %s3551_s3, 128, %s49_s18, [#allocation6]  }
  0x47   :  { %s2572_s16 = smov [#allocation10]   ;;  %s2573_s19 = smov [#allocation11]  }
  0x48   :  { %s69_s17 = sshll.u32 %s2572_s16, 4  ;;  %s82_s8 = sshll.u32 %s2573_s19, 4  ;;  %s70_s17 = int_to_ptr.vmem [resolvable:$true] %s69_s17  ;;  %s83_s8 = int_to_ptr.vmem [resolvable:$true] %s82_s8 }
  0x49   :  { %s2514_s22 = scalar_lea.hbm %s3553_s5, 16384 }
  0x4a   :  { %p2515_p4 = scmp.ne.s32.totalorder %s3553_s5, %s2514_s22  ;;  %p2518_p5 = scmp.lt.u32.totalorder %s2514_s22, %s3553_s5 }
  0x4c   :  { %p2520_p6 = pnand %p2518_p5, %p2515_p4 }
  0x4e   :  { %2523 = shalt.err (!%p2520_p6)
}
  0x4f   :  { %s2524_s3 = scalar_lea.vmem %s70_s17, 16384  ;;  %p2529_p8 = scmp.lt.s32.totalorder %s70_s17, %s70_s17 }
  0x50   :  { %p2525_p7 = scmp.ne.s32.totalorder %s70_s17, %s2524_s3  ;;  %p2530_p9 = scmp.lt.s32.totalorder %s2524_s3, %s2524_s3 }
  0x52   :  { %p2531_p10 = por %p2530_p9, %p2529_p8 }
  0x54   :  { %p2532_p11 = pnand %p2531_p10, %p2525_p7 }
  0x56   :  { %2535 = shalt.err (!%p2532_p11)
}
  0x57   :  { %75 = dma.hbm_to_vmem [thread:$0]  %s3553_s5, 16384, %s70_s17, [#allocation9], %s2568_s1, %s2568_s1, %s2569_s11  }
  0x58   :  { %s2536_s28 = scalar_lea.hbm %s3554_s6, 512 }
  0x59   :  { %p2537_p12 = scmp.ne.s32.totalorder %s3554_s6, %s2536_s28  ;;  %p2540_p13 = scmp.lt.u32.totalorder %s2536_s28, %s3554_s6 }
  0x5b   :  { %p2542_p0 = pnand %p2540_p13, %p2537_p12 }
  0x5d   :  { %2545 = shalt.err (!%p2542_p0)
}
  0x5e   :  { %s2546_s13 = scalar_lea.vmem %s83_s8, 512  ;;  %p2551_p2 = scmp.lt.s32.totalorder %s83_s8, %s83_s8 }
  0x5f   :  { %p2547_p1 = scmp.ne.s32.totalorder %s83_s8, %s2546_s13  ;;  %p2552_p3 = scmp.lt.s32.totalorder %s2546_s13, %s2546_s13 }
  0x61   :  { %p2553_p4 = por %p2552_p3, %p2551_p2 }
  0x63   :  { %p2554_p5 = pnand %p2553_p4, %p2547_p1 }
  0x65   :  { %2557 = shalt.err (!%p2554_p5)
}
  0x66   :  { %85 = dma.hbm_to_vmem [thread:$0]  %s3554_s6, 512, %s83_s8, [#allocation12]  }
  0x67   :  { %2558 = dma.done.wait [#allocation4], 128  }
  0x68   :  { %2559 = vsyncadd [#allocation4], 4294967168 }
  0x69   :  { %2560 = dma.done.wait [#allocation6], 256  }
  0x6a   :  { %2561 = vsyncadd [#allocation6], 4294967040 }
  0x6b   :  { %2562 = dma.done.wait [#allocation9], 18432  }
  0x6c   :  { %2563 = vsyncadd [#allocation9], 4294948864 }
  0x6d   :  { %2564 = dma.done.wait [#allocation12], 512  }
  0x6e   :  { %2565 = vsyncadd [#allocation12], 4294966784  ;;  %v2574_v1 = vmov 0   ;;  %v115_v2 = vld [vmem:[#allocation8] sm:$0xff]  ;;  %v116_v4 = vld [vmem:[#allocation8 + $0x8] sm:$0xff]  ;;  %vm211_vm0 = vcmask 261120  }
  0x6f   :  { %250 = vmatprep.mubr.bf16.mxu0 %v2574_v1  ;;  %303 = vmatprep.mubr.bf16.mxu1 %v2574_v1  ;;  %v119_v3 = vld [vmem:[#allocation8 + $0x20] sm:$0xff]  ;;  %v120_v6 = vld [vmem:[#allocation8 + $0x28] sm:$0xff]  ;;  %v118_v17 = vld [vmem:[#allocation8 + $0x18] sm:$0xff]  ;;  %vm2110_vm1 = vcmask 7168  }
  0x70   :  { %v2121_v5 = vcombine.high %v115_v2, %v119_v3  ;;  %v2120_v7 = vcombine.low %v115_v2, %v119_v3  ;;  %v123_v8 = vld [vmem:[#allocation8 + $0x40] sm:$0xff]  ;;  %v2123_v10 = vcombine.high %v116_v4, %v120_v6  ;;  %v2122_v11 = vcombine.low %v116_v4, %v120_v6  ;;  %v124_v13 = vld [vmem:[#allocation8 + $0x48] sm:$0xff]  ;;  %v122_v18 = vld [vmem:[#allocation8 + $0x38] sm:$0xff] }
  0x71   :  { %v127_v9 = vld [vmem:[#allocation8 + $0x60] sm:$0xff]  ;;  %v128_v14 = vld [vmem:[#allocation8 + $0x68] sm:$0xff]  ;;  %v110_v20 = vld [vmem:[#allocation5] sm:$0xff]  ;;  %v2127_v25 = vcombine.high %v118_v17, %v122_v18  ;;  %v2126_v32 = vcombine.low %v118_v17, %v122_v18 }
  0x72   :  { %v2129_v12 = vcombine.high %v123_v8, %v127_v9  ;;  %218 = vmatprep.subr.bf16.mxu0 %v2121_v5  ;;  %v2131_v15 = vcombine.high %v124_v13, %v128_v14  ;;  %v109_v16 = vld [vmem:[#allocation3] sm:$0xff]  ;;  %271 = vmatprep.subr.bf16.mxu1 %v2123_v10  ;;  %v2128_v19 = vcombine.low %v123_v8, %v127_v9  ;;  %v117_v21 = vld [vmem:[#allocation8 + $0x10] sm:$0xff]  ;;  %v126_v27 = vld [vmem:[#allocation8 + $0x58] sm:$0xff] }
  0x73   :  { %219 = vmatpush1.bf16.msra.mxu0 %v2120_v7  ;;  %v121_v22 = vld [vmem:[#allocation8 + $0x30] sm:$0xff]  ;;  %272 = vmatpush1.bf16.msra.mxu1 %v2122_v11  ;;  %v2130_v23 = vcombine.low %v124_v13, %v128_v14  ;;  %v113_v26 = vpack.c.bf16 %v110_v20, %v109_v16  ;;  %v130_v28 = vld [vmem:[#allocation8 + $0x78] sm:$0xff]  ;;  %v619_v34 = vld [vmem:[#allocation10] sm:$0xff] }
  0x74   :  { %220 = vmatprep.subr.bf16.mxu0 %v2129_v12  ;;  %v2125_v24 = vcombine.high %v117_v21, %v121_v22  ;;  %273 = vmatprep.subr.bf16.mxu1 %v2131_v15  ;;  %v2124_v29 = vcombine.low %v117_v21, %v121_v22  ;;  %v125_v30 = vld [vmem:[#allocation8 + $0x50] sm:$0xff]  ;;  %v2135_v33 = vcombine.high %v126_v27, %v130_v28  ;;  %v623_v35 = vld [vmem:[#allocation10 + $0x20] sm:$0xff]  ;;  %v620_v37 = vld [vmem:[#allocation10 + $0x8] sm:$0xff] }
  0x75   :  { %v129_v31 = vld [vmem:[#allocation8 + $0x70] sm:$0xff]  ;;  %v624_v38 = vld [vmem:[#allocation10 + $0x28] sm:$0xff]  ;;  %v112_v40 = vld [vmem:[#allocation7] sm:$0xff]  ;;  %v2134_v42 = vcombine.low %v126_v27, %v130_v28  ;;  %v2721_v43 = vcombine.high %v619_v34, %v623_v35  ;;  %v2732_v50 = vcombine.low %v619_v34, %v623_v35 }
  0x76   :  { %v2133_v36 = vcombine.high %v125_v30, %v129_v31  ;;  %v111_v39 = vld [vmem:[%s3550_s2] sm:$0xff]  ;;  %v2132_v41 = vcombine.low %v125_v30, %v129_v31  ;;  %v2724_v44 = vcombine.high %v620_v37, %v624_v38  ;;  %v2734_v51 = vcombine.low %v620_v37, %v624_v38 }
  0x77   :  { %221 = vmatpush1.bf16.msra.mxu0 %v2128_v19  ;;  %274 = vmatpush1.bf16.msra.mxu1 %v2130_v23  ;;  %v114_v45 = vpack.c.bf16 %v112_v40, %v111_v39  ;;  %v627_v46 = vld [vmem:[#allocation10 + $0x40] sm:$0xff]  ;;  %v628_v48 = vld [vmem:[#allocation10 + $0x48] sm:$0xff] }
  0x78   :  { %322 = vmatprep.subr.bf16.mxu0 %v2125_v24  ;;  %375 = vmatprep.subr.bf16.mxu1 %v2127_v25  ;;  %v631_v47 = vld [vmem:[#allocation10 + $0x60] sm:$0xff]  ;;  %v632_v49 = vld [vmem:[#allocation10 + $0x68] sm:$0xff] }
  0x79   :  { %v2736_v52 = vcombine.high %v627_v46, %v631_v47  ;;  %v2738_v53 = vcombine.high %v628_v48, %v632_v49  ;;  %v635_v54 = vld [vmem:[#allocation10 + $0x80] sm:$0xff]  ;;  %v636_v56 = vld [vmem:[#allocation10 + $0x88] sm:$0xff]  ;;  %v2743_v58 = vcombine.low %v627_v46, %v631_v47  ;;  %v2747_v59 = vcombine.low %v628_v48, %v632_v49 }
  0x7a   :  { %2136 = vmatmul.mubr.msk.bf16.vlgmr.msra.gmra.mrb[0].mxu0 %vm211_vm0, %v113_v26  ;;  %2138 = vmatmul.mubr.msk.bf16.vlgmr.msra.gmra.mrb[0].mxu1 %vm211_vm0, %v113_v26  ;;  %v639_v55 = vld [vmem:[#allocation10 + $0xa0] sm:$0xff]  ;;  %v640_v57 = vld [vmem:[#allocation10 + $0xa8] sm:$0xff] }
  0x7b   :  { %323 = vmatpush1.bf16.msra.mxu0 %v2124_v29  ;;  %376 = vmatpush1.bf16.msra.mxu1 %v2126_v32  ;;  %v2749_v60 = vcombine.high %v635_v54, %v639_v55  ;;  %v2752_v61 = vcombine.high %v636_v56, %v640_v57  ;;  %v643_v62 = vld [vmem:[#allocation10 + $0xc0] sm:$0xff]  ;;  %v644_v0 = vld [vmem:[#allocation10 + $0xc8] sm:$0xff]  ;;  %v2757_v3 = vcombine.low %v635_v54, %v639_v55 }
  0x7c   :  { %260 = vmatprep.mubr.bf16.mxu0 %v2574_v1  ;;  %311 = vmatprep.mubr.bf16.mxu1 %v2574_v1  ;;  %v647_v63 = vld [vmem:[#allocation10 + $0xe0] sm:$0xff]  ;;  %v648_v2 = vld [vmem:[#allocation10 + $0xe8] sm:$0xff]  ;;  %v2761_v4 = vcombine.low %v636_v56, %v640_v57 }
  0x7d   :  { %377 = vmatprep.subr.bf16.mxu1 %v2135_v33  ;;  %324 = vmatprep.subr.bf16.mxu0 %v2133_v36  ;;  %v2763_v5 = vcombine.high %v643_v62, %v647_v63  ;;  %v2766_v6 = vcombine.high %v644_v0, %v648_v2  ;;  %v2775_v7 = vcombine.low %v644_v0, %v648_v2  ;;  %v651_v8 = vld [vmem:[#allocation10 + $0x100] sm:$0xff]  ;;  %v652_v10 = vld [vmem:[#allocation10 + $0x108] sm:$0xff] }
  0x7e   :  { %v655_v9 = vld [vmem:[#allocation10 + $0x120] sm:$0xff]  ;;  %v656_v11 = vld [vmem:[#allocation10 + $0x128] sm:$0xff] }
  0x7f   :  { %325 = vmatpush1.bf16.msra.mxu0 %v2132_v41  ;;  %378 = vmatpush1.bf16.msra.mxu1 %v2134_v42  ;;  %v2780_v12 = vcombine.low %v651_v8, %v655_v9  ;;  %v2782_v13 = vcombine.high %v651_v8, %v655_v9  ;;  %v2784_v14 = vcombine.low %v652_v10, %v656_v11  ;;  %v659_v16 = vld [vmem:[#allocation10 + $0x140] sm:$0xff]  ;;  %v660_v18 = vld [vmem:[#allocation10 + $0x148] sm:$0xff] }
  0x80   :  { %1421 = vmatprep.subr.bf16.mxu0 %v2721_v43  ;;  %1462 = vmatprep.subr.bf16.mxu1 %v2724_v44  ;;  %v2786_v15 = vcombine.high %v652_v10, %v656_v11  ;;  %v663_v17 = vld [vmem:[#allocation10 + $0x160] sm:$0xff]  ;;  %v664_v20 = vld [vmem:[#allocation10 + $0x168] sm:$0xff] }
  0x81   :  { %v2790_v19 = vcombine.high %v659_v16, %v663_v17  ;;  %v2794_v21 = vcombine.low %v659_v16, %v663_v17  ;;  %v2796_v22 = vcombine.low %v660_v18, %v664_v20  ;;  %v2798_v23 = vcombine.high %v660_v18, %v664_v20  ;;  %v667_v24 = vld [vmem:[#allocation10 + $0x180] sm:$0xff]  ;;  %v672_v28 = vld [vmem:[#allocation10 + $0x1a8] sm:$0xff] }
  0x82   :  { %2137 = vmatmul.mubr.msk.bf16.gmra.mrb[4].mxu0 %vm211_vm0, %v114_v45  ;;  %2139 = vmatmul.mubr.msk.bf16.gmra.mrb[4].mxu1 %vm211_vm0, %v114_v45  ;;  %v671_v25 = vld [vmem:[#allocation10 + $0x1a0] sm:$0xff]  ;;  %v676_v34 = vld [vmem:[#allocation10 + $0x1c8] sm:$0xff] }
  0x83   :  { %354 = vmatprep.mubr.bf16.mxu0 %v2574_v1  ;;  %407 = vmatprep.mubr.bf16.mxu1 %v2574_v1  ;;  %v2802_v27 = vcombine.high %v667_v24, %v671_v25  ;;  %v2806_v29 = vcombine.low %v667_v24, %v671_v25  ;;  %v675_v32 = vld [vmem:[#allocation10 + $0x1c0] sm:$0xff]  ;;  %v680_v36 = vld [vmem:[#allocation10 + $0x1e8] sm:$0xff] }
  0x84   :  { %v679_v33 = vld [vmem:[#allocation10 + $0x1e0] sm:$0xff]  ;;  %v2820_v38 = vcombine.low %v676_v34, %v680_v36  ;;  %v2822_v39 = vcombine.high %v676_v34, %v680_v36  ;;  %v684_v42 = vld [vmem:[#allocation10 + $0x208] sm:$0xff] }
  0x85   :  { %3738 = vst [vmem:[#allocation17_spill] sm:$0xff] %v2806_v29  ;;  %v2814_v35 = vcombine.high %v675_v32, %v679_v33  ;;  %v2818_v37 = vcombine.low %v675_v32, %v679_v33  ;;  %v683_v40 = vld [vmem:[#allocation10 + $0x200] sm:$0xff]  ;;  %v688_v46 = vld [vmem:[#allocation10 + $0x228] sm:$0xff] }
  0x86   :  { %3742 = vst [vmem:[#allocation21_spill] sm:$0xff] %v2820_v38  ;;  %3743 = vst [vmem:[#allocation22_spill] sm:$0xff] %v2822_v39  ;;  %v687_v41 = vld [vmem:[#allocation10 + $0x220] sm:$0xff]  ;;  %v2833_v48 = vcombine.low %v684_v42, %v688_v46  ;;  %v2835_v49 = vcombine.high %v684_v42, %v688_v46  ;;  %v692_v56 = vld [vmem:[#allocation10 + $0x248] sm:$0xff] }
  0x87   :  { %3740 = vst [vmem:[#allocation19_spill] sm:$0xff] %v2814_v35  ;;  %3741 = vst [vmem:[#allocation20_spill] sm:$0xff] %v2818_v37  ;;  %v2830_v47 = vcombine.low %v683_v40, %v687_v41  ;;  %v691_v54 = vld [vmem:[#allocation10 + $0x240] sm:$0xff]  ;;  %v700_v10 = vld [vmem:[#allocation10 + $0x288] sm:$0xff] }
  0x88   :  { %3746 = vst [vmem:[#allocation25_spill] sm:$0xff] %v2833_v48  ;;  %3747 = vst [vmem:[#allocation26_spill] sm:$0xff] %v2835_v49  ;;  %v695_v55 = vld [vmem:[#allocation10 + $0x260] sm:$0xff]  ;;  %v704_v16 = vld [vmem:[#allocation10 + $0x2a8] sm:$0xff] }
  0x89   :  { %3745 = vst [vmem:[#allocation24_spill] sm:$0xff] %v2830_v47  ;;  %v2838_v57 = vcombine.high %v691_v54, %v695_v55  ;;  %v699_v8 = vld [vmem:[#allocation10 + $0x280] sm:$0xff]  ;;  %v2856_v18 = vcombine.low %v700_v10, %v704_v16  ;;  %v2858_v20 = vcombine.high %v700_v10, %v704_v16  ;;  %v712_v32 = vld [vmem:[#allocation10 + $0x2e8] sm:$0xff] }
  0x8a   :  { %2140 = vmatmul.mubr.msk.bf16.vlgmr.msra.gmra.mrb[8].mxu0 %vm211_vm0, %v113_v26  ;;  %2142 = vmatmul.mubr.msk.bf16.vlgmr.msra.gmra.mrb[8].mxu1 %vm211_vm0, %v113_v26  ;;  %v668_v26 = vld [vmem:[#allocation10 + $0x188] sm:$0xff]  ;;  %v703_v9 = vld [vmem:[#allocation10 + $0x2a0] sm:$0xff] }
  0x8b   :  { %1422 = vmatpush1.bf16.msra.mxu0 %v2732_v50  ;;  %1463 = vmatpush1.bf16.msra.mxu1 %v2734_v51  ;;  %v2809_v30 = vcombine.low %v668_v26, %v672_v28  ;;  %v2811_v31 = vcombine.high %v668_v26, %v672_v28  ;;  %3748 = vst [vmem:[#allocation27_spill] sm:$0xff] %v2838_v57  ;;  %3754 = vst [vmem:[#allocation33_spill] sm:$0xff] %v2856_v18  ;;  %v707_v24 = vld [vmem:[#allocation10 + $0x2c0] sm:$0xff]  ;;  %v708_v26 = vld [vmem:[#allocation10 + $0x2c8] sm:$0xff] }
  0x8c   :  { %1423 = vmatprep.subr.bf16.mxu0 %v2736_v52  ;;  %1464 = vmatprep.subr.bf16.mxu1 %v2738_v53  ;;  %v2850_v11 = vcombine.high %v699_v8, %v703_v9  ;;  %v2854_v17 = vcombine.low %v699_v8, %v703_v9  ;;  %3755 = vst [vmem:[#allocation34_spill] sm:$0xff] %v2858_v20  ;;  %v711_v25 = vld [vmem:[#allocation10 + $0x2e0] sm:$0xff]  ;;  %v716_v42 = vld [vmem:[#allocation10 + $0x308] sm:$0xff] }
  0x8d   :  { %364 = vmatprep.mubr.bf16.mxu0 %v2574_v1  ;;  %417 = vmatprep.mubr.bf16.mxu1 %v2574_v1  ;;  %v2770_v1 = vcombine.low %v643_v62, %v647_v63  ;;  %3739 = vst [vmem:[#allocation18_spill] sm:$0xff] %v2809_v30  ;;  %v696_v62 = vld [vmem:[#allocation10 + $0x268] sm:$0xff]  ;;  %v2842_v63 = vcombine.low %v691_v54, %v695_v55  ;;  %v723_v8 = vld [vmem:[#allocation10 + $0x340] sm:$0xff] }
  0x8e   :  { %v2844_v0 = vcombine.low %v692_v56, %v696_v62  ;;  %v2846_v2 = vcombine.high %v692_v56, %v696_v62  ;;  %3752 = vst [vmem:[#allocation31_spill] sm:$0xff] %v2850_v11  ;;  %3753 = vst [vmem:[#allocation32_spill] sm:$0xff] %v2854_v17  ;;  %v2862_v28 = vcombine.high %v707_v24, %v711_v25  ;;  %v720_v54 = vld [vmem:[#allocation10 + $0x328] sm:$0xff]  ;;  %v727_v9 = vld [vmem:[#allocation10 + $0x360] sm:$0xff] }
  0x8f   :  { %1424 = vmatpush1.bf16.msra.mxu0 %v2743_v58  ;;  %1465 = vmatpush1.bf16.msra.mxu1 %v2747_v59  ;;  %3749 = vst [vmem:[#allocation28_spill] sm:$0xff] %v2842_v63  ;;  %v2866_v33 = vcombine.low %v707_v24, %v711_v25  ;;  %v2868_v34 = vcombine.low %v708_v26, %v712_v32  ;;  %v724_v10 = vld [vmem:[#allocation10 + $0x348] sm:$0xff]  ;;  %v731_v25 = vld [vmem:[#allocation10 + $0x380] sm:$0xff] }
  0x90   :  { %1425 = vmatprep.subr.bf16.mxu0 %v2749_v60  ;;  %1466 = vmatprep.subr.bf16.mxu1 %v2752_v61  ;;  %3750 = vst [vmem:[#allocation29_spill] sm:$0xff] %v2844_v0  ;;  %3751 = vst [vmem:[#allocation30_spill] sm:$0xff] %v2846_v2  ;;  %v2870_v36 = vcombine.high %v708_v26, %v712_v32  ;;  %v2880_v56 = vcombine.low %v716_v42, %v720_v54  ;;  %v728_v24 = vld [vmem:[#allocation10 + $0x368] sm:$0xff]  ;;  %v735_v26 = vld [vmem:[#allocation10 + $0x3a0] sm:$0xff] }
  0x91   :  { %3756 = vst [vmem:[#allocation35_spill] sm:$0xff] %v2862_v28  ;;  %3757 = vst [vmem:[#allocation36_spill] sm:$0xff] %v2866_v33  ;;  %v2882_v62 = vcombine.high %v716_v42, %v720_v54  ;;  %v2886_v16 = vcombine.high %v723_v8, %v727_v9  ;;  %v2890_v32 = vcombine.low %v723_v8, %v727_v9  ;;  %v732_v42 = vld [vmem:[#allocation10 + $0x388] sm:$0xff] }
  0x92   :  { %2141 = vmatmul.mubr.msk.bf16.gmra.mrb[12].mxu0 %vm211_vm0, %v114_v45  ;;  %2143 = vmatmul.mubr.msk.bf16.gmra.mrb[12].mxu1 %vm211_vm0, %v114_v45  ;;  %v2826_v45 = vcombine.high %v683_v40, %v687_v41  ;;  %3758 = vst [vmem:[#allocation37_spill] sm:$0xff] %v2868_v34  ;;  %3759 = vst [vmem:[#allocation38_spill] sm:$0xff] %v2870_v36  ;;  %v715_v40 = vld [vmem:[#allocation10 + $0x300] sm:$0xff]  ;;  %v736_v54 = vld [vmem:[#allocation10 + $0x3a8] sm:$0xff]  ;;  %v2904_v8 = vcombine.low %v731_v25, %v735_v26 }
  0x93   :  { %1426 = vmatpush1.bf16.msra.mxu0 %v2757_v3  ;;  %1467 = vmatpush1.bf16.msra.mxu1 %v2761_v4  ;;  %v719_v41 = vld [vmem:[#allocation10 + $0x320] sm:$0xff]  ;;  %3762 = vst [vmem:[#allocation41_spill] sm:$0xff] %v2880_v56  ;;  %3763 = vst [vmem:[#allocation42_spill] sm:$0xff] %v2882_v62  ;;  %v2906_v9 = vcombine.low %v732_v42, %v736_v54 }
  0x94   :  { %1427 = vmatprep.subr.bf16.mxu0 %v2763_v5  ;;  %1468 = vmatprep.subr.bf16.mxu1 %v2766_v6  ;;  %3744 = vst [vmem:[#allocation23_spill] sm:$0xff] %v2826_v45  ;;  %v2874_v46 = vcombine.high %v715_v40, %v719_v41  ;;  %v2878_v55 = vcombine.low %v715_v40, %v719_v41  ;;  %3764 = vst [vmem:[#allocation43_spill] sm:$0xff] %v2886_v16 }
  0x95   :  { %3765 = vst [vmem:[#allocation44_spill] sm:$0xff] %v2890_v32  ;;  %v2892_v40 = vcombine.low %v724_v10, %v728_v24  ;;  %v2894_v41 = vcombine.high %v724_v10, %v728_v24  ;;  %3770 = vst [vmem:[#allocation49_spill] sm:$0xff] %v2904_v8 }
  0x96   :  { %3760 = vst [vmem:[#allocation39_spill] sm:$0xff] %v2874_v46  ;;  %3761 = vst [vmem:[#allocation40_spill] sm:$0xff] %v2878_v55 }
  0x97   :  { %1428 = vmatpush1.bf16.msra.mxu0 %v2770_v1  ;;  %1469 = vmatpush1.bf16.msra.mxu1 %v2775_v7  ;;  %3766 = vst [vmem:[#allocation45_spill] sm:$0xff] %v2892_v40  ;;  %3767 = vst [vmem:[#allocation46_spill] sm:$0xff] %v2894_v41 }
  0x98   :  { %1429 = vmatprep.subr.bf16.mxu0 %v2782_v13  ;;  %1470 = vmatprep.subr.bf16.mxu1 %v2786_v15  ;;  %3771 = vst [vmem:[#allocation50_spill] sm:$0xff] %v2906_v9 }
  0x9b   :  { %1430 = vmatpush1.bf16.msra.mxu0 %v2780_v12  ;;  %1471 = vmatpush1.bf16.msra.mxu1 %v2784_v14 }
  0x9c   :  { %1431 = vmatprep.subr.bf16.mxu0 %v2790_v19  ;;  %1472 = vmatprep.subr.bf16.mxu1 %v2798_v23 }
  0x9f   :  { %1432 = vmatpush1.bf16.msra.mxu0 %v2794_v21  ;;  %1473 = vmatpush1.bf16.msra.mxu1 %v2796_v22 }
  0xa0   :  { %1433 = vmatprep.subr.bf16.mxu0 %v2802_v27  ;;  %1474 = vmatprep.subr.bf16.mxu1 %v2811_v31 }
  0xa3   :  { %1434 = vmatpush1.bf16.msra.mxu0 %v2806_v29  ;;  %1475 = vmatpush1.bf16.msra.mxu1 %v2809_v30 }
  0xa4   :  { %1435 = vmatprep.subr.bf16.mxu0 %v2814_v35  ;;  %1476 = vmatprep.subr.bf16.mxu1 %v2822_v39 }
  0xa7   :  { %1436 = vmatpush1.bf16.msra.mxu0 %v2818_v37  ;;  %1477 = vmatpush1.bf16.msra.mxu1 %v2820_v38 }
  0xa8   :  { %1437 = vmatprep.subr.bf16.mxu0 %v2826_v45  ;;  %1478 = vmatprep.subr.bf16.mxu1 %v2835_v49 }
  0xab   :  { %1438 = vmatpush1.bf16.msra.mxu0 %v2830_v47  ;;  %1479 = vmatpush1.bf16.msra.mxu1 %v2833_v48 }
  0xac   :  { %1439 = vmatprep.subr.bf16.mxu0 %v2838_v57  ;;  %1480 = vmatprep.subr.bf16.mxu1 %v2846_v2 }
  0xaf   :  { %1440 = vmatpush1.bf16.msra.mxu0 %v2842_v63  ;;  %1481 = vmatpush1.bf16.msra.mxu1 %v2844_v0 }
  0xb0   :  { %1441 = vmatprep.subr.bf16.mxu0 %v2850_v11  ;;  %1482 = vmatprep.subr.bf16.mxu1 %v2858_v20  ;;  %v518_v20 = vld [vmem:[#allocation11 + $0x2] ss:$4 sm:$0xff] }
  0xb3   :  { %1442 = vmatpush1.bf16.msra.mxu0 %v2854_v17  ;;  %1483 = vmatpush1.bf16.msra.mxu1 %v2856_v18 }
  0xb4   :  { %1443 = vmatprep.subr.bf16.mxu0 %v2862_v28  ;;  %1484 = vmatprep.subr.bf16.mxu1 %v2870_v36 }
  0xb7   :  { %1444 = vmatpush1.bf16.msra.mxu0 %v2866_v33  ;;  %1485 = vmatpush1.bf16.msra.mxu1 %v2868_v34  ;;  %v739_v34 = vld [vmem:[#allocation10 + $0x3c0] sm:$0xff]  ;;  %v740_v33 = vld [vmem:[#allocation10 + $0x3c8] sm:$0xff] }
  0xb8   :  { %1445 = vmatprep.subr.bf16.mxu0 %v2874_v46  ;;  %1486 = vmatprep.subr.bf16.mxu1 %v2882_v62  ;;  %v2897_v62 = vcombine.high %v731_v25, %v735_v26  ;;  %v2899_v46 = vcombine.high %v732_v42, %v736_v54  ;;  %v621_v25 = vld [vmem:[#allocation10 + $0x10] sm:$0xff]  ;;  %v622_v42 = vld [vmem:[#allocation10 + $0x18] sm:$0xff] }
  0xb9   :  { %v625_v26 = vld [vmem:[#allocation10 + $0x30] sm:$0xff] }
  0xba   :  { %3768 = vst [vmem:[#allocation47_spill] sm:$0xff] %v2897_v62  ;;  %3769 = vst [vmem:[#allocation48_spill] sm:$0xff] %v2899_v46  ;;  %v2922_v54 = vcombine.high %v621_v25, %v625_v26 }
  0xbb   :  { %1446 = vmatpush1.bf16.msra.mxu0 %v2878_v55  ;;  %1487 = vmatpush1.bf16.msra.mxu1 %v2880_v56  ;;  %v743_v55 = vld [vmem:[#allocation10 + $0x3e0] sm:$0xff]  ;;  %v744_v56 = vld [vmem:[#allocation10 + $0x3e8] sm:$0xff] }
  0xbc   :  { %1447 = vmatprep.subr.bf16.mxu0 %v2886_v16  ;;  %1488 = vmatprep.subr.bf16.mxu1 %v2894_v41  ;;  %v2910_v10 = vcombine.high %v739_v34, %v743_v55  ;;  %v2912_v24 = vcombine.high %v740_v33, %v744_v56  ;;  %v2916_v41 = vcombine.low %v739_v34, %v743_v55  ;;  %v430_v55 = vlaneseq }
  0xbd   :  { %3776 = vst [vmem:[#allocation55_spill] sm:$0xff] %v2922_v54 }
  0xbe   :  { %3772 = vst [vmem:[#allocation51_spill] sm:$0xff] %v2910_v10  ;;  %3773 = vst [vmem:[#allocation52_spill] sm:$0xff] %v2912_v24 }
  0xbf   :  { %1448 = vmatpush1.bf16.msra.mxu0 %v2890_v32  ;;  %1489 = vmatpush1.bf16.msra.mxu1 %v2892_v40  ;;  %3774 = vst [vmem:[#allocation53_spill] sm:$0xff] %v2916_v41  ;;  %v2918_v32 = vcombine.low %v740_v33, %v744_v56  ;;  %v431_v56 = vshrl.u32 %v430_v55, 7 }
  0xc0   :  { %1449 = vmatprep.subr.bf16.mxu0 %v2897_v62  ;;  %1490 = vmatprep.subr.bf16.mxu1 %v2899_v46  ;;  %v626_v46 = vld [vmem:[#allocation10 + $0x38] sm:$0xff] }
  0xc1   :  { %3775 = vst [vmem:[#allocation54_spill] sm:$0xff] %v2918_v32  ;;  %v2928_v34 = vcombine.low %v622_v42, %v626_v46  ;;  %v2930_v33 = vcombine.high %v622_v42, %v626_v46  ;;  %v483_v46 = vsub.s32 3, %v431_v56 }
  0xc3   :  { %1450 = vmatpush1.bf16.msra.mxu0 %v2904_v8  ;;  %1491 = vmatpush1.bf16.msra.mxu1 %v2906_v9  ;;  %v2926_v8 = vcombine.low %v621_v25, %v625_v26  ;;  %3778 = vst [vmem:[#allocation57_spill] sm:$0xff] %v2928_v34  ;;  %3779 = vst [vmem:[#allocation58_spill] sm:$0xff] %v2930_v33  ;;  %v2938_v9 = vsub.s32 1, %v431_v56  ;;  %v2942_v26 = vld [vmem:[#allocation11 + $0x1] ss:$4 sm:$0xff] }
  0xc4   :  { %1451 = vmatprep.subr.bf16.mxu0 %v2910_v10  ;;  %1492 = vmatprep.subr.bf16.mxu1 %v2912_v24  ;;  %v2934_v24 = vsub.s32 0, %v431_v56  ;;  %v2936_v10 = vld [vmem:[#allocation11] ss:$4 sm:$0xff]  ;;  %v484_v40 = vrot.slane %v2942_v26, %v483_v46 }
  0xc5   :  { %3777 = vst [vmem:[#allocation56_spill] sm:$0xff] %v2926_v8  ;;  %3781 = vst [vmem:[#allocation60_spill] sm:$0xff] %v2938_v9  ;;  %v437_v42 = vrot.slane %v2936_v10, %v2938_v9 }
  0xc6   :  { %3780 = vst [vmem:[#allocation59_spill] sm:$0xff] %v2934_v24  ;;  %v433_v25 = vrot.slane %v2936_v10, %v2934_v24 }
  0xc7   :  { %1452 = vmatpush1.bf16.msra.mxu0 %v2916_v41  ;;  %1493 = vmatpush1.bf16.msra.mxu1 %v2918_v32  ;;  %v479_v41 = vsub.s32 2, %v431_v56 }
  0xc8   :  { %1503 = vmatprep.subr.bf16.mxu0 %v2922_v54  ;;  %1544 = vmatprep.subr.bf16.mxu1 %v2930_v33 }
  0xc9   :  { %v480_v33 = vrot.slane %v2942_v26, %v479_v41 }
 0x14d   :  { %v252_v54 = vpop.f32.mrb[0].mxu0  ;;  %v305_v32 = vpop.f32.mrb[0].mxu1 }
 0x14e   :  { %v460_v55 = vadd.f32 %v433_v25, %v252_v54  ;;  %v254_v62 = vpop.f32.mrb[1].mxu0  ;;  %v306_v36 = vpop.f32.mrb[1].mxu1  ;;  %v569_v32 = vld [vmem:[#allocation11 + $0x3] ss:$4 sm:$0xff]  ;;  %v531_v54 = vrot.slane %v518_v20, %v479_v41  ;;  %v535_v25 = vrot.slane %v518_v20, %v483_v46 }
 0x14f   :  { %v461_v16 = vadd.f32 %v437_v42, %v254_v62  ;;  %v2948_v28 = vpop.f32.mrb[2].mxu0  ;;  %v307_v24 = vpop.f32.mrb[2].mxu1  ;;  %v582_v36 = vrot.slane %v569_v32, %v479_v41  ;;  %v2974_v41 = vsub.s32 7, %v431_v56 }
 0x150   :  { %3782 = vst [vmem:[#allocation61_spill] sm:$0xff] %v2948_v28  ;;  %v2144_v18 = vmul.f32 -1.442695, %v460_v55  ;;  %v2950_v17 = vpop.f32.mrb[3].mxu0  ;;  %v2952_v0 = vadd.f32 %v480_v33, %v307_v24  ;;  %v309_v9 = vpop.f32.mrb[3].mxu1  ;;  %v586_v28 = vrot.slane %v569_v32, %v483_v46 }
 0x151   :  { %3783 = vst [vmem:[#allocation62_spill] sm:$0xff] %v2950_v17  ;;  %v2145_v11 = vmul.f32 -1.442695, %v461_v16  ;;  %v2954_v63 = vadd.f32 %v484_v40, %v309_v9  ;;  %v2960_v17 = vsub.s32 4, %v431_v56  ;;  %v2968_v40 = vsub.s32 5, %v431_v56 }
 0x152   :  { %2304 = vpow2.f32 %v2144_v18  ;;  %v2966_v18 = vsub.s32 6, %v431_v56 }
 0x153   :  { %2306 = vpow2.f32 %v2145_v11  ;;  %3786 = vst [vmem:[#allocation65_spill] sm:$0xff] %v2960_v17  ;;  %3790 = vst [vmem:[#allocation69_spill] sm:$0xff] %v2968_v40 }
 0x154   :  { %3789 = vst [vmem:[#allocation68_spill] sm:$0xff] %v2966_v18 }
 0x155   :  { %v2956_v62 = vpop.f32.mrb[4].mxu0  ;;  %v313_v42 = vpop.f32.mrb[4].mxu1 }
 0x156   :  { %3784 = vst [vmem:[#allocation63_spill] sm:$0xff] %v2956_v62  ;;  %v2958_v55 = vpop.f32.mrb[5].mxu0  ;;  %v2962_v16 = vadd.f32 %v531_v54, %v313_v42  ;;  %v315_v24 = vpop.f32.mrb[5].mxu1  ;;  %v441_v54 = vrot.slane %v2936_v10, %v2960_v17  ;;  %v449_v42 = vrot.slane %v2936_v10, %v2966_v18 }
 0x157   :  { %3785 = vst [vmem:[#allocation64_spill] sm:$0xff] %v2958_v55  ;;  %v2964_v33 = vpop.f32.mrb[6].mxu0  ;;  %v2970_v11 = vadd.f32 %v535_v25, %v315_v24  ;;  %v317_v20 = vpop.f32.mrb[6].mxu1  ;;  %v445_v25 = vrot.slane %v2936_v10, %v2968_v40 }
 0x158   :  { %3787 = vst [vmem:[#allocation66_spill] sm:$0xff] %v2962_v16  ;;  %3788 = vst [vmem:[#allocation67_spill] sm:$0xff] %v2964_v33  ;;  %v2972_v9 = vpop.f32.mrb[7].mxu0  ;;  %v2976_v55 = vadd.f32 %v582_v36, %v317_v20  ;;  %v319_v46 = vpop.f32.mrb[7].mxu1 }
 0x159   :  { %3791 = vst [vmem:[#allocation70_spill] sm:$0xff] %v2970_v11  ;;  %3792 = vst [vmem:[#allocation71_spill] sm:$0xff] %v2972_v9  ;;  %v2978_v32 = vadd.f32 %v586_v28, %v319_v46  ;;  %v453_v9 = vrot.slane %v2936_v10, %v2974_v41 }
 0x15a   :  { %3793 = vst [vmem:[#allocation72_spill] sm:$0xff] %v2976_v55 }
 0x15b   :  { %3794 = vst [vmem:[#allocation73_spill] sm:$0xff] %v2978_v32 }
 0x15c   :  { %v2305_v24 = vpop.eup %2304 }
 0x15d   :  { %v2307_v56 = vpop.eup %2306  ;;  %v753_v33 = vadd.f32 1.0, %v2305_v24  ;;  %v356_v36 = vpop.f32.mrb[8].mxu0 }
 0x15e   :  { %v754_v20 = vadd.f32 1.0, %v2307_v56  ;;  %v462_v55 = vadd.f32 %v441_v54, %v356_v36  ;;  %v409_v28 = vpop.f32.mrb[8].mxu1  ;;  %v358_v46 = vpop.f32.mrb[9].mxu0 }
 0x15f   :  { %2308 = vrcp.f32 %v753_v33  ;;  %v464_v32 = vadd.f32 %v449_v42, %v409_v28  ;;  %v463_v11 = vadd.f32 %v445_v25, %v358_v46  ;;  %v411_v16 = vpop.f32.mrb[9].mxu1  ;;  %v2988_v62 = vpop.f32.mrb[10].mxu0 }
 0x160   :  { %2310 = vrcp.f32 %v754_v20  ;;  %v465_v18 = vadd.f32 %v453_v9, %v411_v16  ;;  %v2990_v40 = vpop.f32.mrb[10].mxu1  ;;  %v2992_v17 = vpop.f32.mrb[11].mxu0 }
 0x161   :  { %3795 = vst [vmem:[#allocation74_spill] sm:$0xff] %v2990_v40  ;;  %3796 = vst [vmem:[#allocation75_spill] sm:$0xff] %v2992_v17  ;;  %2312 = vtanh.f32 %v462_v55  ;;  %v2146_v10 = vmul.f32 -1.442695, %v464_v32  ;;  %v2994_v24 = vpop.f32.mrb[11].mxu1  ;;  %v646_v40 = vld [vmem:[#allocation10 + $0xd8] sm:$0xff] }
 0x162   :  { %3797 = vst [vmem:[#allocation76_spill] sm:$0xff] %v2994_v24  ;;  %2314 = vtanh.f32 %v463_v11  ;;  %v2147_v54 = vmul.f32 -1.442695, %v465_v18  ;;  %v630_v24 = vld [vmem:[#allocation10 + $0x58] sm:$0xff] }
 0x163   :  { %2316 = vpow2.f32 %v2146_v10 }
 0x164   :  { %2318 = vpow2.f32 %v2147_v54 }
 0x165   :  { %v2996_v33 = vpop.f32.mrb[12].mxu0  ;;  %v2998_v42 = vpop.f32.mrb[12].mxu1 }
 0x166   :  { %3798 = vst [vmem:[#allocation77_spill] sm:$0xff] %v2996_v33  ;;  %3799 = vst [vmem:[#allocation78_spill] sm:$0xff] %v2998_v42  ;;  %v3000_v25 = vpop.f32.mrb[13].mxu0  ;;  %v3002_v56 = vpop.f32.mrb[13].mxu1 }
 0x167   :  { %3800 = vst [vmem:[#allocation79_spill] sm:$0xff] %v3000_v25  ;;  %3801 = vst [vmem:[#allocation80_spill] sm:$0xff] %v3002_v56  ;;  %v3004_v16 = vpop.f32.mrb[14].mxu0  ;;  %v3006_v9 = vpop.f32.mrb[14].mxu1 }
 0x168   :  { %3802 = vst [vmem:[#allocation81_spill] sm:$0xff] %v3004_v16  ;;  %3803 = vst [vmem:[#allocation82_spill] sm:$0xff] %v3006_v9  ;;  %v3008_v55 = vpop.f32.mrb[15].mxu0  ;;  %v3010_v36 = vpop.f32.mrb[15].mxu1 }
 0x169   :  { %3804 = vst [vmem:[#allocation83_spill] sm:$0xff] %v3008_v55  ;;  %v2309_v32 = vpop.eup %2308  ;;  %3805 = vst [vmem:[#allocation84_spill] sm:$0xff] %v3010_v36 }
 0x16a   :  { %v2311_v18 = vpop.eup %2310 }
 0x16b   :  { %v2313_v11 = vpop.eup %2312 }
 0x16c   :  { %v2315_v20 = vpop.eup %2314  ;;  %v3012_v28 = vmul.f32 %v2313_v11, %v2309_v32  ;;  %v629_v32 = vld [vmem:[#allocation10 + $0x50] sm:$0xff] }
 0x16d   :  { %v2317_v46 = vpop.eup %2316  ;;  %v3014_v10 = vmul.f32 %v2315_v20, %v2311_v18  ;;  %v633_v11 = vld [vmem:[#allocation10 + $0x70] sm:$0xff]  ;;  %v634_v18 = vld [vmem:[#allocation10 + $0x78] sm:$0xff] }
 0x16e   :  { %3806 = vst [vmem:[#allocation85_spill] sm:$0xff] %v3012_v28  ;;  %v2319_v54 = vpop.eup %2318  ;;  %2320 = vtanh.f32 %v3012_v28  ;;  %v767_v56 = vadd.f32 1.0, %v2317_v46  ;;  %v637_v28 = vld [vmem:[#allocation10 + $0x90] sm:$0xff]  ;;  %v3020_v46 = vcombine.high %v629_v32, %v633_v11 }
 0x16f   :  { %3807 = vst [vmem:[#allocation86_spill] sm:$0xff] %v3014_v10  ;;  %2322 = vtanh.f32 %v3014_v10  ;;  %v768_v9 = vadd.f32 1.0, %v2319_v54  ;;  %v638_v54 = vld [vmem:[#allocation10 + $0x98] sm:$0xff] }
 0x170   :  { %2324 = vrcp.f32 %v767_v56  ;;  %3808 = vst [vmem:[#allocation87_spill] sm:$0xff] %v3020_v46  ;;  %v3022_v56 = vcombine.high %v630_v24, %v634_v18  ;;  %v642_v10 = vld [vmem:[#allocation10 + $0xb8] sm:$0xff] }
 0x171   :  { %2326 = vrcp.f32 %v768_v9  ;;  %v641_v9 = vld [vmem:[#allocation10 + $0xb0] sm:$0xff] }
 0x172   :  { %3809 = vst [vmem:[#allocation88_spill] sm:$0xff] %v3022_v56 }
 0x178   :  { %v2321_v55 = vpop.eup %2320 }
 0x179   :  { %v2323_v16 = vpop.eup %2322 }
 0x17a   :  { %v2325_v36 = vpop.eup %2324 }
 0x17b   :  { %v2327_v25 = vpop.eup %2326  ;;  %v777_v42 = vmul.f32 %v2325_v36, %v2321_v55  ;;  %v645_v55 = vld [vmem:[#allocation10 + $0xd0] sm:$0xff] }
 0x17c   :  { %v778_v33 = vmul.f32 %v2327_v25, %v2323_v16  ;;  %v3032_v25 = vcombine.high %v637_v28, %v641_v9  ;;  %v3034_v16 = vcombine.high %v638_v54, %v642_v10  ;;  %v649_v36 = vld [vmem:[#allocation10 + $0xf0] sm:$0xff] }
 0x17d   :  { %v3018_v17 = vpack.c.bf16 %v777_v42, %v777_v42  ;;  %v3030_v42 = vcombine.low %v630_v24, %v634_v18  ;;  %v3040_v24 = vcombine.low %v637_v28, %v641_v9  ;;  %v3052_v28 = vcombine.low %v645_v55, %v649_v36 }
 0x17e   :  { %v780_v20 = vpack.c.bf16 %v778_v33, %v778_v33  ;;  %v3028_v33 = vcombine.low %v629_v32, %v633_v11  ;;  %3812 = vst [vmem:[#allocation91_spill] sm:$0xff] %v3032_v25  ;;  %3813 = vst [vmem:[#allocation92_spill] sm:$0xff] %v3034_v16  ;;  %v3042_v32 = vcombine.low %v638_v54, %v642_v10 }
 0x17f   :  { %3811 = vst [vmem:[#allocation90_spill] sm:$0xff] %v3030_v42  ;;  %3814 = vst [vmem:[#allocation93_spill] sm:$0xff] %v3040_v24  ;;  %v3046_v11 = vcombine.high %v645_v55, %v649_v36 }
 0x180   :  { %1453 = vmatprep.mubr.bf16.mxu0 %v780_v20  ;;  %1494 = vmatprep.mubr.bf16.mxu1 %v780_v20  ;;  %3810 = vst [vmem:[#allocation89_spill] sm:$0xff] %v3028_v33  ;;  %3815 = vst [vmem:[#allocation94_spill] sm:$0xff] %v3042_v32 }
 0x181   :  { %1454 = vmatmul.mubr.bf16.vlgmr.msra.gmra.mrb[16].mxu0 %v3018_v17  ;;  %1495 = vmatmul.mubr.bf16.vlgmr.msra.gmra.mrb[16].mxu1 %v3018_v17  ;;  %3816 = vst [vmem:[#allocation95_spill] sm:$0xff] %v3046_v11  ;;  %3818 = vst [vmem:[#allocation97_spill] sm:$0xff] %v3052_v28 }
 0x182   :  { %1504 = vmatpush1.bf16.msra.mxu0 %v2926_v8  ;;  %1545 = vmatpush1.bf16.msra.mxu1 %v2928_v34  ;;  %v650_v8 = vld [vmem:[#allocation10 + $0xf8] sm:$0xff] }
 0x183   :  { %1535 = vmatprep.mubr.bf16.mxu0 %v780_v20  ;;  %1576 = vmatprep.mubr.bf16.mxu1 %v780_v20  ;;  %v3048_v18 = vcombine.high %v646_v40, %v650_v8  ;;  %v653_v20 = vld [vmem:[#allocation10 + $0x110] sm:$0xff]  ;;  %v658_v34 = vld [vmem:[#allocation10 + $0x138] sm:$0xff]  ;;  %v3054_v10 = vcombine.low %v646_v40, %v650_v8 }
 0x184   :  { %1505 = vmatprep.subr.bf16.mxu0 %v3020_v46  ;;  %1546 = vmatprep.subr.bf16.mxu1 %v3022_v56  ;;  %v657_v56 = vld [vmem:[#allocation10 + $0x130] sm:$0xff]  ;;  %v654_v46 = vld [vmem:[#allocation10 + $0x118] sm:$0xff] }
 0x185   :  { %3817 = vst [vmem:[#allocation96_spill] sm:$0xff] %v3048_v18  ;;  %3819 = vst [vmem:[#allocation98_spill] sm:$0xff] %v3054_v10  ;;  %v3058_v9 = vcombine.high %v653_v20, %v657_v56  ;;  %v3060_v54 = vcombine.high %v654_v46, %v658_v34  ;;  %v3064_v55 = vcombine.low %v653_v20, %v657_v56 }
 0x186   :  { %1506 = vmatpush1.bf16.msra.mxu0 %v3028_v33  ;;  %1547 = vmatpush1.bf16.msra.mxu1 %v3030_v42  ;;  %v662_v42 = vld [vmem:[#allocation10 + $0x158] sm:$0xff]  ;;  %v3066_v8 = vcombine.low %v654_v46, %v658_v34 }
 0x187   :  { %1507 = vmatprep.subr.bf16.mxu0 %v3032_v25  ;;  %1548 = vmatprep.subr.bf16.mxu1 %v3034_v16  ;;  %3820 = vst [vmem:[#allocation99_spill] sm:$0xff] %v3058_v9  ;;  %3821 = vst [vmem:[#allocation100_spill] sm:$0xff] %v3060_v54  ;;  %v661_v16 = vld [vmem:[#allocation10 + $0x150] sm:$0xff]  ;;  %v666_v33 = vld [vmem:[#allocation10 + $0x178] sm:$0xff] }
 0x188   :  { %v665_v25 = vld [vmem:[#allocation10 + $0x170] sm:$0xff]  ;;  %3822 = vst [vmem:[#allocation101_spill] sm:$0xff] %v3064_v55  ;;  %3823 = vst [vmem:[#allocation102_spill] sm:$0xff] %v3066_v8  ;;  %v3072_v36 = vcombine.high %v662_v42, %v666_v33  ;;  %v3078_v34 = vcombine.low %v662_v42, %v666_v33 }
 0x189   :  { %v3070_v40 = vcombine.high %v661_v16, %v665_v25  ;;  %v3076_v56 = vcombine.low %v661_v16, %v665_v25 }
 0x18a   :  { %1508 = vmatpush1.bf16.msra.mxu0 %v3040_v24  ;;  %1549 = vmatpush1.bf16.msra.mxu1 %v3042_v32  ;;  %3825 = vst [vmem:[#allocation104_spill] sm:$0xff] %v3072_v36  ;;  %v670_v32 = vld [vmem:[#allocation10 + $0x198] sm:$0xff]  ;;  %3827 = vst [vmem:[#allocation106_spill] sm:$0xff] %v3078_v34 }
 0x18b   :  { %1509 = vmatprep.subr.bf16.mxu0 %v3046_v11  ;;  %1550 = vmatprep.subr.bf16.mxu1 %v3048_v18  ;;  %3824 = vst [vmem:[#allocation103_spill] sm:$0xff] %v3070_v40  ;;  %v669_v18 = vld [vmem:[#allocation10 + $0x190] sm:$0xff]  ;;  %v674_v24 = vld [vmem:[#allocation10 + $0x1b8] sm:$0xff]  ;;  %3826 = vst [vmem:[#allocation105_spill] sm:$0xff] %v3076_v56 }
 0x18c   :  { %v673_v11 = vld [vmem:[#allocation10 + $0x1b0] sm:$0xff]  ;;  %v3084_v20 = vcombine.high %v670_v32, %v674_v24  ;;  %v3090_v33 = vcombine.low %v670_v32, %v674_v24 }
 0x18d   :  { %v3082_v46 = vcombine.high %v669_v18, %v673_v11  ;;  %v3088_v25 = vcombine.low %v669_v18, %v673_v11 }
 0x18e   :  { %1510 = vmatpush1.bf16.msra.mxu0 %v3052_v28  ;;  %1551 = vmatpush1.bf16.msra.mxu1 %v3054_v10  ;;  %3829 = vst [vmem:[#allocation108_spill] sm:$0xff] %v3084_v20  ;;  %v678_v10 = vld [vmem:[#allocation10 + $0x1d8] sm:$0xff]  ;;  %3831 = vst [vmem:[#allocation110_spill] sm:$0xff] %v3090_v33 }
 0x18f   :  { %1511 = vmatprep.subr.bf16.mxu0 %v3058_v9  ;;  %1552 = vmatprep.subr.bf16.mxu1 %v3060_v54  ;;  %3828 = vst [vmem:[#allocation107_spill] sm:$0xff] %v3082_v46  ;;  %v677_v54 = vld [vmem:[#allocation10 + $0x1d0] sm:$0xff]  ;;  %v682_v28 = vld [vmem:[#allocation10 + $0x1f8] sm:$0xff]  ;;  %3830 = vst [vmem:[#allocation109_spill] sm:$0xff] %v3088_v25 }
 0x190   :  { %v681_v9 = vld [vmem:[#allocation10 + $0x1f0] sm:$0xff]  ;;  %v3096_v16 = vcombine.high %v678_v10, %v682_v28  ;;  %v3102_v24 = vcombine.low %v678_v10, %v682_v28 }
 0x191   :  { %v3094_v42 = vcombine.high %v677_v54, %v681_v9  ;;  %v3100_v11 = vcombine.low %v677_v54, %v681_v9 }
 0x192   :  { %1512 = vmatpush1.bf16.msra.mxu0 %v3064_v55  ;;  %1553 = vmatpush1.bf16.msra.mxu1 %v3066_v8  ;;  %3833 = vst [vmem:[#allocation112_spill] sm:$0xff] %v3096_v16  ;;  %v686_v8 = vld [vmem:[#allocation10 + $0x218] sm:$0xff]  ;;  %3835 = vst [vmem:[#allocation114_spill] sm:$0xff] %v3102_v24 }
 0x193   :  { %1513 = vmatprep.subr.bf16.mxu0 %v3070_v40  ;;  %1554 = vmatprep.subr.bf16.mxu1 %v3072_v36  ;;  %3832 = vst [vmem:[#allocation111_spill] sm:$0xff] %v3094_v42  ;;  %v685_v36 = vld [vmem:[#allocation10 + $0x210] sm:$0xff]  ;;  %v690_v55 = vld [vmem:[#allocation10 + $0x238] sm:$0xff]  ;;  %3834 = vst [vmem:[#allocation113_spill] sm:$0xff] %v3100_v11 }
 0x194   :  { %v689_v40 = vld [vmem:[#allocation10 + $0x230] sm:$0xff]  ;;  %v3108_v18 = vcombine.high %v686_v8, %v690_v55  ;;  %v3114_v28 = vcombine.low %v686_v8, %v690_v55 }
 0x195   :  { %v3106_v32 = vcombine.high %v685_v36, %v689_v40  ;;  %v3112_v9 = vcombine.low %v685_v36, %v689_v40 }
 0x196   :  { %1514 = vmatpush1.bf16.msra.mxu0 %v3076_v56  ;;  %1555 = vmatpush1.bf16.msra.mxu1 %v3078_v34  ;;  %3837 = vst [vmem:[#allocation116_spill] sm:$0xff] %v3108_v18  ;;  %v694_v34 = vld [vmem:[#allocation10 + $0x258] sm:$0xff]  ;;  %3839 = vst [vmem:[#allocation118_spill] sm:$0xff] %v3114_v28 }
 0x197   :  { %1515 = vmatprep.subr.bf16.mxu0 %v3082_v46  ;;  %1556 = vmatprep.subr.bf16.mxu1 %v3084_v20  ;;  %3836 = vst [vmem:[#allocation115_spill] sm:$0xff] %v3106_v32  ;;  %v693_v20 = vld [vmem:[#allocation10 + $0x250] sm:$0xff]  ;;  %v698_v56 = vld [vmem:[#allocation10 + $0x278] sm:$0xff]  ;;  %3838 = vst [vmem:[#allocation117_spill] sm:$0xff] %v3112_v9 }
 0x198   :  { %v697_v46 = vld [vmem:[#allocation10 + $0x270] sm:$0xff]  ;;  %v3120_v54 = vcombine.high %v694_v34, %v698_v56  ;;  %v3126_v55 = vcombine.low %v694_v34, %v698_v56 }
 0x199   :  { %v3118_v10 = vcombine.high %v693_v20, %v697_v46  ;;  %v3124_v40 = vcombine.low %v693_v20, %v697_v46 }
 0x19a   :  { %1516 = vmatpush1.bf16.msra.mxu0 %v3088_v25  ;;  %1557 = vmatpush1.bf16.msra.mxu1 %v3090_v33  ;;  %3841 = vst [vmem:[#allocation120_spill] sm:$0xff] %v3120_v54  ;;  %v702_v33 = vld [vmem:[#allocation10 + $0x298] sm:$0xff]  ;;  %3843 = vst [vmem:[#allocation122_spill] sm:$0xff] %v3126_v55 }
 0x19b   :  { %1517 = vmatprep.subr.bf16.mxu0 %v3094_v42  ;;  %1558 = vmatprep.subr.bf16.mxu1 %v3096_v16  ;;  %3840 = vst [vmem:[#allocation119_spill] sm:$0xff] %v3118_v10  ;;  %v701_v16 = vld [vmem:[#allocation10 + $0x290] sm:$0xff]  ;;  %v706_v25 = vld [vmem:[#allocation10 + $0x2b8] sm:$0xff]  ;;  %3842 = vst [vmem:[#allocation121_spill] sm:$0xff] %v3124_v40 }
 0x19c   :  { %v705_v42 = vld [vmem:[#allocation10 + $0x2b0] sm:$0xff]  ;;  %v3132_v36 = vcombine.high %v702_v33, %v706_v25  ;;  %v3138_v56 = vcombine.low %v702_v33, %v706_v25 }
 0x19d   :  { %v3130_v8 = vcombine.high %v701_v16, %v705_v42  ;;  %v3136_v46 = vcombine.low %v701_v16, %v705_v42 }
 0x19e   :  { %1518 = vmatpush1.bf16.msra.mxu0 %v3100_v11  ;;  %1559 = vmatpush1.bf16.msra.mxu1 %v3102_v24  ;;  %3845 = vst [vmem:[#allocation124_spill] sm:$0xff] %v3132_v36  ;;  %v710_v24 = vld [vmem:[#allocation10 + $0x2d8] sm:$0xff]  ;;  %3847 = vst [vmem:[#allocation126_spill] sm:$0xff] %v3138_v56 }
 0x19f   :  { %1519 = vmatprep.subr.bf16.mxu0 %v3106_v32  ;;  %1560 = vmatprep.subr.bf16.mxu1 %v3108_v18  ;;  %3844 = vst [vmem:[#allocation123_spill] sm:$0xff] %v3130_v8  ;;  %v709_v18 = vld [vmem:[#allocation10 + $0x2d0] sm:$0xff]  ;;  %v714_v11 = vld [vmem:[#allocation10 + $0x2f8] sm:$0xff]  ;;  %3846 = vst [vmem:[#allocation125_spill] sm:$0xff] %v3136_v46 }
 0x1a0   :  { %v713_v32 = vld [vmem:[#allocation10 + $0x2f0] sm:$0xff]  ;;  %v3144_v20 = vcombine.high %v710_v24, %v714_v11  ;;  %v3150_v25 = vcombine.low %v710_v24, %v714_v11 }
 0x1a1   :  { %v3142_v34 = vcombine.high %v709_v18, %v713_v32  ;;  %v3148_v42 = vcombine.low %v709_v18, %v713_v32 }
 0x1a2   :  { %1520 = vmatpush1.bf16.msra.mxu0 %v3112_v9  ;;  %1561 = vmatpush1.bf16.msra.mxu1 %v3114_v28  ;;  %3849 = vst [vmem:[#allocation128_spill] sm:$0xff] %v3144_v20  ;;  %v718_v28 = vld [vmem:[#allocation10 + $0x318] sm:$0xff]  ;;  %3851 = vst [vmem:[#allocation130_spill] sm:$0xff] %v3150_v25 }
 0x1a3   :  { %1521 = vmatprep.subr.bf16.mxu0 %v3118_v10  ;;  %1562 = vmatprep.subr.bf16.mxu1 %v3120_v54  ;;  %3848 = vst [vmem:[#allocation127_spill] sm:$0xff] %v3142_v34  ;;  %v717_v54 = vld [vmem:[#allocation10 + $0x310] sm:$0xff]  ;;  %v722_v9 = vld [vmem:[#allocation10 + $0x338] sm:$0xff]  ;;  %3850 = vst [vmem:[#allocation129_spill] sm:$0xff] %v3148_v42 }
 0x1a4   :  { %v721_v10 = vld [vmem:[#allocation10 + $0x330] sm:$0xff]  ;;  %v3156_v16 = vcombine.high %v718_v28, %v722_v9  ;;  %v3162_v11 = vcombine.low %v718_v28, %v722_v9 }
 0x1a5   :  { %v3154_v33 = vcombine.high %v717_v54, %v721_v10  ;;  %v3160_v32 = vcombine.low %v717_v54, %v721_v10 }
 0x1a6   :  { %1522 = vmatpush1.bf16.msra.mxu0 %v3124_v40  ;;  %1563 = vmatpush1.bf16.msra.mxu1 %v3126_v55  ;;  %3853 = vst [vmem:[#allocation132_spill] sm:$0xff] %v3156_v16  ;;  %v726_v55 = vld [vmem:[#allocation10 + $0x358] sm:$0xff] }
 0x1a7   :  { %1523 = vmatprep.subr.bf16.mxu0 %v3130_v8  ;;  %1564 = vmatprep.subr.bf16.mxu1 %v3132_v36  ;;  %3852 = vst [vmem:[#allocation131_spill] sm:$0xff] %v3154_v33  ;;  %v725_v36 = vld [vmem:[#allocation10 + $0x350] sm:$0xff]  ;;  %v730_v40 = vld [vmem:[#allocation10 + $0x378] sm:$0xff] }
 0x1a8   :  { %v729_v8 = vld [vmem:[#allocation10 + $0x370] sm:$0xff]  ;;  %v3168_v18 = vcombine.high %v726_v55, %v730_v40  ;;  %v3174_v9 = vcombine.low %v726_v55, %v730_v40 }
 0x1a9   :  { %v3166_v24 = vcombine.high %v725_v36, %v729_v8  ;;  %v3172_v10 = vcombine.low %v725_v36, %v729_v8 }
 0x1aa   :  { %1524 = vmatpush1.bf16.msra.mxu0 %v3136_v46  ;;  %1565 = vmatpush1.bf16.msra.mxu1 %v3138_v56  ;;  %3854 = vst [vmem:[#allocation133_spill] sm:$0xff] %v3168_v18  ;;  %v734_v56 = vld [vmem:[#allocation10 + $0x398] sm:$0xff] }
 0x1ab   :  { %1525 = vmatprep.subr.bf16.mxu0 %v3142_v34  ;;  %1566 = vmatprep.subr.bf16.mxu1 %v3144_v20  ;;  %v733_v20 = vld [vmem:[#allocation10 + $0x390] sm:$0xff]  ;;  %v738_v46 = vld [vmem:[#allocation10 + $0x3b8] sm:$0xff]  ;;  %3855 = vst [vmem:[#allocation134_spill] sm:$0xff] %v3172_v10 }
 0x1ac   :  { %v737_v34 = vld [vmem:[#allocation10 + $0x3b0] sm:$0xff]  ;;  %v3180_v54 = vcombine.high %v734_v56, %v738_v46  ;;  %v3186_v40 = vcombine.low %v734_v56, %v738_v46  ;;  %v3857_v46 = vld [vmem:[#allocation29_spill] sm:$0xff] }
 0x1ad   :  { %v3178_v28 = vcombine.high %v733_v20, %v737_v34  ;;  %v3184_v8 = vcombine.low %v733_v20, %v737_v34  ;;  %v3858_v56 = vld [vmem:[#allocation31_spill] sm:$0xff]  ;;  %v3859_v34 = vld [vmem:[#allocation34_spill] sm:$0xff]  ;;  %v3860_v20 = vld [vmem:[#allocation32_spill] sm:$0xff] }
 0x1ae   :  { %1526 = vmatpush1.bf16.msra.mxu0 %v3148_v42  ;;  %1567 = vmatpush1.bf16.msra.mxu1 %v3150_v25  ;;  %v742_v25 = vld [vmem:[#allocation10 + $0x3d8] sm:$0xff] }
 0x1af   :  { %1527 = vmatprep.subr.bf16.mxu0 %v3154_v33  ;;  %1568 = vmatprep.subr.bf16.mxu1 %v3156_v16  ;;  %v741_v16 = vld [vmem:[#allocation10 + $0x3d0] sm:$0xff]  ;;  %v746_v42 = vld [vmem:[#allocation10 + $0x3f8] sm:$0xff] }
 0x1b0   :  { %v745_v33 = vld [vmem:[#allocation10 + $0x3f0] sm:$0xff]  ;;  %v3192_v36 = vcombine.high %v742_v25, %v746_v42 }
 0x1b1   :  { %v3190_v55 = vcombine.high %v741_v16, %v745_v33 }
 0x1b2   :  { %1528 = vmatpush1.bf16.msra.mxu0 %v3160_v32  ;;  %1569 = vmatpush1.bf16.msra.mxu1 %v3162_v11 }
 0x1b3   :  { %1529 = vmatprep.subr.bf16.mxu0 %v3166_v24  ;;  %1570 = vmatprep.subr.bf16.mxu1 %v3168_v18  ;;  %v3196_v18 = vcombine.low %v741_v16, %v745_v33  ;;  %v3863_v33 = vld [vmem:[#allocation38_spill] sm:$0xff]  ;;  %v3864_v16 = vld [vmem:[#allocation36_spill] sm:$0xff] }
 0x1b6   :  { %1530 = vmatpush1.bf16.msra.mxu0 %v3172_v10  ;;  %1571 = vmatpush1.bf16.msra.mxu1 %v3174_v9  ;;  %v3198_v10 = vcombine.low %v742_v25, %v746_v42  ;;  %v3861_v42 = vld [vmem:[#allocation33_spill] sm:$0xff]  ;;  %v3862_v25 = vld [vmem:[#allocation35_spill] sm:$0xff] }
 0x1b7   :  { %1531 = vmatprep.subr.bf16.mxu0 %v3178_v28  ;;  %1572 = vmatprep.subr.bf16.mxu1 %v3180_v54 }
 0x1ba   :  { %1532 = vmatpush1.bf16.msra.mxu0 %v3184_v8  ;;  %1573 = vmatpush1.bf16.msra.mxu1 %v3186_v40 }
 0x1bb   :  { %1533 = vmatprep.subr.bf16.mxu0 %v3190_v55  ;;  %1574 = vmatprep.subr.bf16.mxu1 %v3192_v36 }
 0x1be   :  { %1534 = vmatpush1.bf16.msra.mxu0 %v3196_v18  ;;  %1575 = vmatpush1.bf16.msra.mxu1 %v3198_v10 }
 0x1bf   :  { %1643 = vmatprep.subr.bf16.mxu0 %v2721_v43  ;;  %1684 = vmatprep.subr.bf16.mxu1 %v2724_v44 }
 0x1c1   :  { %1536 = vmatmul.mubr.bf16.vlgmr.msra.gmra.mrb[20].mxu0 %v3018_v17  ;;  %1577 = vmatmul.mubr.bf16.vlgmr.msra.gmra.mrb[20].mxu1 %v3018_v17  ;;  %v3856_v17 = vld [vmem:[#allocation28_spill] sm:$0xff] }
 0x1c2   :  { %1644 = vmatpush1.bf16.msra.mxu0 %v2732_v50  ;;  %1685 = vmatpush1.bf16.msra.mxu1 %v2734_v51 }
 0x1c3   :  { %1645 = vmatprep.subr.bf16.mxu0 %v2736_v52  ;;  %1686 = vmatprep.subr.bf16.mxu1 %v2738_v53 }
 0x1c6   :  { %1646 = vmatpush1.bf16.msra.mxu0 %v2743_v58  ;;  %1687 = vmatpush1.bf16.msra.mxu1 %v2747_v59 }
 0x1c7   :  { %1647 = vmatprep.subr.bf16.mxu0 %v2749_v60  ;;  %1688 = vmatprep.subr.bf16.mxu1 %v2752_v61 }
 0x1ca   :  { %1648 = vmatpush1.bf16.msra.mxu0 %v2757_v3  ;;  %1689 = vmatpush1.bf16.msra.mxu1 %v2761_v4 }
 0x1cb   :  { %1649 = vmatprep.subr.bf16.mxu0 %v2763_v5  ;;  %1690 = vmatprep.subr.bf16.mxu1 %v2766_v6 }
 0x1ce   :  { %1650 = vmatpush1.bf16.msra.mxu0 %v2770_v1  ;;  %1691 = vmatpush1.bf16.msra.mxu1 %v2775_v7 }
 0x1cf   :  { %1651 = vmatprep.subr.bf16.mxu0 %v2782_v13  ;;  %1692 = vmatprep.subr.bf16.mxu1 %v2786_v15 }
 0x1d2   :  { %1652 = vmatpush1.bf16.msra.mxu0 %v2780_v12  ;;  %1693 = vmatpush1.bf16.msra.mxu1 %v2784_v14 }
 0x1d3   :  { %1653 = vmatprep.subr.bf16.mxu0 %v2790_v19  ;;  %1694 = vmatprep.subr.bf16.mxu1 %v2798_v23 }
 0x1d6   :  { %1654 = vmatpush1.bf16.msra.mxu0 %v2794_v21  ;;  %1695 = vmatpush1.bf16.msra.mxu1 %v2796_v22 }
 0x1d7   :  { %1655 = vmatprep.subr.bf16.mxu0 %v2802_v27  ;;  %1696 = vmatprep.subr.bf16.mxu1 %v2811_v31 }
 0x1da   :  { %1656 = vmatpush1.bf16.msra.mxu0 %v2806_v29  ;;  %1697 = vmatpush1.bf16.msra.mxu1 %v2809_v30 }
 0x1db   :  { %1657 = vmatprep.subr.bf16.mxu0 %v2814_v35  ;;  %1698 = vmatprep.subr.bf16.mxu1 %v2822_v39 }
 0x1de   :  { %1658 = vmatpush1.bf16.msra.mxu0 %v2818_v37  ;;  %1699 = vmatpush1.bf16.msra.mxu1 %v2820_v38 }
 0x1df   :  { %1659 = vmatprep.subr.bf16.mxu0 %v2826_v45  ;;  %1700 = vmatprep.subr.bf16.mxu1 %v2835_v49 }
 0x1e2   :  { %1660 = vmatpush1.bf16.msra.mxu0 %v2830_v47  ;;  %1701 = vmatpush1.bf16.msra.mxu1 %v2833_v48  ;;  %v3886_v48 = vld [vmem:[#allocation61_spill] sm:$0xff]  ;;  %v3887_v47 = vld [vmem:[#allocation62_spill] sm:$0xff] }
 0x1e3   :  { %1661 = vmatprep.subr.bf16.mxu0 %v2838_v57  ;;  %1702 = vmatprep.subr.bf16.mxu1 %v2846_v2  ;;  %v3865_v57 = vld [vmem:[#allocation37_spill] sm:$0xff]  ;;  %v3866_v2 = vld [vmem:[#allocation39_spill] sm:$0xff] }
 0x1e6   :  { %1662 = vmatpush1.bf16.msra.mxu0 %v3856_v17  ;;  %1703 = vmatpush1.bf16.msra.mxu1 %v3857_v46  ;;  %v3867_v17 = vld [vmem:[#allocation42_spill] sm:$0xff]  ;;  %v3868_v46 = vld [vmem:[#allocation40_spill] sm:$0xff] }
 0x1e7   :  { %1663 = vmatprep.subr.bf16.mxu0 %v3858_v56  ;;  %1704 = vmatprep.subr.bf16.mxu1 %v3859_v34  ;;  %v3869_v56 = vld [vmem:[#allocation41_spill] sm:$0xff]  ;;  %v3870_v34 = vld [vmem:[#allocation43_spill] sm:$0xff] }
 0x1ea   :  { %1664 = vmatpush1.bf16.msra.mxu0 %v3860_v20  ;;  %1705 = vmatpush1.bf16.msra.mxu1 %v3861_v42  ;;  %v3871_v20 = vld [vmem:[#allocation46_spill] sm:$0xff]  ;;  %v3872_v42 = vld [vmem:[#allocation44_spill] sm:$0xff] }
 0x1eb   :  { %1665 = vmatprep.subr.bf16.mxu0 %v3862_v25  ;;  %1706 = vmatprep.subr.bf16.mxu1 %v3863_v33  ;;  %v3873_v25 = vld [vmem:[#allocation45_spill] sm:$0xff]  ;;  %v3874_v33 = vld [vmem:[#allocation47_spill] sm:$0xff] }
 0x1ee   :  { %1666 = vmatpush1.bf16.msra.mxu0 %v3864_v16  ;;  %1707 = vmatpush1.bf16.msra.mxu1 %v3865_v57  ;;  %v3875_v16 = vld [vmem:[#allocation48_spill] sm:$0xff]  ;;  %v3876_v57 = vld [vmem:[#allocation49_spill] sm:$0xff] }
 0x1ef   :  { %1667 = vmatprep.subr.bf16.mxu0 %v3866_v2  ;;  %1708 = vmatprep.subr.bf16.mxu1 %v3867_v17  ;;  %v3877_v2 = vld [vmem:[#allocation50_spill] sm:$0xff]  ;;  %v3878_v17 = vld [vmem:[#allocation51_spill] sm:$0xff] }
 0x1f2   :  { %1668 = vmatpush1.bf16.msra.mxu0 %v3868_v46  ;;  %1709 = vmatpush1.bf16.msra.mxu1 %v3869_v56  ;;  %v3879_v46 = vld [vmem:[#allocation52_spill] sm:$0xff]  ;;  %v3880_v56 = vld [vmem:[#allocation53_spill] sm:$0xff] }
 0x1f3   :  { %1669 = vmatprep.subr.bf16.mxu0 %v3870_v34  ;;  %1710 = vmatprep.subr.bf16.mxu1 %v3871_v20  ;;  %v3881_v34 = vld [vmem:[#allocation54_spill] sm:$0xff]  ;;  %v3882_v20 = vld [vmem:[#allocation55_spill] sm:$0xff] }
 0x1f6   :  { %1670 = vmatpush1.bf16.msra.mxu0 %v3872_v42  ;;  %1711 = vmatpush1.bf16.msra.mxu1 %v3873_v25  ;;  %v3883_v42 = vld [vmem:[#allocation58_spill] sm:$0xff]  ;;  %v3884_v25 = vld [vmem:[#allocation59_spill] sm:$0xff] }
 0x1f7   :  { %1671 = vmatprep.subr.bf16.mxu0 %v3874_v33  ;;  %1712 = vmatprep.subr.bf16.mxu1 %v3875_v16  ;;  %v472_v33 = vrot.slane %v2942_v26, %v3884_v25  ;;  %v3885_v16 = vld [vmem:[#allocation60_spill] sm:$0xff] }
 0x1fa   :  { %1672 = vmatpush1.bf16.msra.mxu0 %v3876_v57  ;;  %1713 = vmatpush1.bf16.msra.mxu1 %v3877_v2  ;;  %v476_v57 = vrot.slane %v2942_v26, %v3885_v16  ;;  %v509_v2 = vadd.f32 %v472_v33, %v3886_v48  ;;  %v3893_v33 = vld [vmem:[#allocation76_spill] sm:$0xff] }
 0x1fb   :  { %1673 = vmatprep.subr.bf16.mxu0 %v3878_v17  ;;  %1714 = vmatprep.subr.bf16.mxu1 %v3879_v46 }
 0x1fc   :  { %v510_v17 = vadd.f32 %v476_v57, %v3887_v47 }
 0x1fe   :  { %1674 = vmatpush1.bf16.msra.mxu0 %v3880_v56  ;;  %1715 = vmatpush1.bf16.msra.mxu1 %v3881_v34 }
 0x1ff   :  { %1725 = vmatprep.subr.bf16.mxu0 %v3882_v20  ;;  %1766 = vmatprep.subr.bf16.mxu1 %v3883_v42 }
 0x254   :  { %v1455_v49 = vpop.f32.mrb[16].mxu0  ;;  %v1496_v46 = vpop.f32.mrb[16].mxu1 }
 0x255   :  { %v1585_v45 = vadd.f32 %v1455_v49, %v509_v2  ;;  %v1587_v56 = vadd.f32 %v1496_v46, %v2952_v0  ;;  %v1457_v34 = vpop.f32.mrb[17].mxu0  ;;  %v1498_v38 = vpop.f32.mrb[17].mxu1  ;;  %v3888_v2 = vld [vmem:[#allocation65_spill] sm:$0xff] }
 0x256   :  { %v1586_v20 = vadd.f32 %v1457_v34, %v510_v17  ;;  %v1588_v42 = vadd.f32 %v1498_v38, %v2954_v63  ;;  %v1459_v37 = vpop.f32.mrb[18].mxu0  ;;  %v1500_v39 = vpop.f32.mrb[18].mxu1  ;;  %v488_v17 = vrot.slane %v2942_v26, %v3888_v2  ;;  %v3889_v38 = vld [vmem:[#allocation68_spill] sm:$0xff]  ;;  %v3891_v34 = vld [vmem:[#allocation74_spill] sm:$0xff] }
 0x257   :  { %v1460_v25 = vpop.f32.mrb[19].mxu0  ;;  %v1501_v35 = vpop.f32.mrb[19].mxu1  ;;  %v2276_v30 = vmul.f32 -1.442695, %v1585_v45  ;;  %v2278_v16 = vmul.f32 -1.442695, %v1587_v56  ;;  %v496_v37 = vrot.slane %v2942_v26, %v3889_v38 }
 0x258   :  { %v2277_v29 = vmul.f32 -1.442695, %v1586_v20  ;;  %v2279_v48 = vmul.f32 -1.442695, %v1588_v42  ;;  %v3890_v35 = vld [vmem:[#allocation69_spill] sm:$0xff]  ;;  %v513_v56 = vadd.f32 %v488_v17, %v2988_v62  ;;  %v3892_v42 = vld [vmem:[#allocation75_spill] sm:$0xff] }
 0x259   :  { %2328 = vpow2.f32 %v2276_v30  ;;  %v492_v45 = vrot.slane %v2942_v26, %v3890_v35  ;;  %v500_v30 = vrot.slane %v2942_v26, %v2974_v41  ;;  %v515_v20 = vadd.f32 %v496_v37, %v3891_v34 }
 0x25a   :  { %2330 = vpow2.f32 %v2278_v16 }
 0x25b   :  { %2332 = vpow2.f32 %v2277_v29  ;;  %v514_v25 = vadd.f32 %v492_v45, %v3892_v42  ;;  %v516_v16 = vadd.f32 %v500_v30, %v3893_v33  ;;  %v3894_v42 = vld [vmem:[#allocation85_spill] sm:$0xff]  ;;  %v3895_v33 = vld [vmem:[#allocation86_spill] sm:$0xff] }
 0x25c   :  { %2334 = vpow2.f32 %v2279_v48 }
 0x263   :  { %v2329_v47 = vpop.eup %2328 }
 0x264   :  { %v2331_v49 = vpop.eup %2330  ;;  %v1599_v39 = vadd.f32 1.0, %v2329_v47 }
 0x265   :  { %v2333_v57 = vpop.eup %2332  ;;  %v1611_v63 = vadd.f32 1.0, %v2331_v49 }
 0x266   :  { %v2335_v0 = vpop.eup %2334  ;;  %v1600_v29 = vadd.f32 1.0, %v2333_v57  ;;  %2336 = vrcp.f32 %v1599_v39 }
 0x267   :  { %v1612_v46 = vadd.f32 1.0, %v2335_v0  ;;  %2338 = vrcp.f32 %v1611_v63 }
 0x268   :  { %2340 = vrcp.f32 %v1600_v29 }
 0x269   :  { %2342 = vrcp.f32 %v1612_v46 }
 0x270   :  { %v2337_v30 = vpop.eup %2336 }
 0x271   :  { %v2339_v63 = vpop.eup %2338 }
 0x272   :  { %v2341_v29 = vpop.eup %2340  ;;  %v1631_v46 = vmul.f32 %v2339_v63, %v3894_v42  ;;  %v3896_v63 = vld [vmem:[#allocation56_spill] sm:$0xff]  ;;  %v3901_v42 = vld [vmem:[#allocation90_spill] sm:$0xff] }
 0x294   :  { %v1537_v48 = vpop.f32.mrb[20].mxu0  ;;  %v1578_v47 = vpop.f32.mrb[20].mxu1 }
 0x295   :  { %v1589_v35 = vadd.f32 %v1537_v48, %v513_v56  ;;  %v1591_v38 = vadd.f32 %v1578_v47, %v515_v20  ;;  %v1539_v2 = vpop.f32.mrb[21].mxu0  ;;  %v1580_v26 = vpop.f32.mrb[21].mxu1 }
 0x296   :  { %v1590_v49 = vadd.f32 %v1539_v2, %v514_v25  ;;  %v1592_v57 = vadd.f32 %v1580_v26, %v516_v16  ;;  %v1541_v0 = vpop.f32.mrb[22].mxu0  ;;  %v1582_v62 = vpop.f32.mrb[22].mxu1 }
 0x297   :  { %2344 = vtanh.f32 %v1589_v35  ;;  %v2280_v17 = vmul.f32 -1.442695, %v1591_v38  ;;  %v1542_v37 = vpop.f32.mrb[23].mxu0  ;;  %v1583_v39 = vpop.f32.mrb[23].mxu1 }
 0x298   :  { %2346 = vtanh.f32 %v1590_v49  ;;  %v2281_v45 = vmul.f32 -1.442695, %v1592_v57  ;;  %v2343_v56 = vpop.eup %2342 }
 0x299   :  { %2348 = vpow2.f32 %v2280_v17  ;;  %v1632_v16 = vmul.f32 %v2343_v56, %v3895_v33  ;;  %v3898_v56 = vld [vmem:[#allocation87_spill] sm:$0xff]  ;;  %v3905_v33 = vld [vmem:[#allocation94_spill] sm:$0xff] }
 0x29a   :  { %2350 = vpow2.f32 %v2281_v45 }
 0x2a1   :  { %v2345_v34 = vpop.eup %2344 }
 0x2a2   :  { %v2347_v20 = vpop.eup %2346  ;;  %v1633_v2 = vmul.f32 %v2345_v34, %v2337_v30  ;;  %v3899_v34 = vld [vmem:[#allocation88_spill] sm:$0xff] }
 0x2a3   :  { %v2349_v25 = vpop.eup %2348  ;;  %v1634_v35 = vmul.f32 %v2347_v20, %v2341_v29  ;;  %v3897_v29 = vld [vmem:[#allocation57_spill] sm:$0xff] }
 0x2a4   :  { %v2351_v38 = vpop.eup %2350  ;;  %v3294_v48 = vadd.f32 %v1633_v2, %v1631_v46  ;;  %v1625_v47 = vadd.f32 1.0, %v2349_v25  ;;  %v3900_v20 = vld [vmem:[#allocation89_spill] sm:$0xff]  ;;  %v3902_v46 = vld [vmem:[#allocation91_spill] sm:$0xff]  ;;  %v3903_v2 = vld [vmem:[#allocation92_spill] sm:$0xff] }
 0x2a5   :  { %v3296_v26 = vadd.f32 %v1634_v35, %v1632_v16  ;;  %v1626_v49 = vadd.f32 1.0, %v2351_v38  ;;  %v3904_v25 = vld [vmem:[#allocation93_spill] sm:$0xff]  ;;  %v3906_v16 = vld [vmem:[#allocation95_spill] sm:$0xff]  ;;  %v3907_v35 = vld [vmem:[#allocation96_spill] sm:$0xff] }
 0x2a6   :  { %2352 = vtanh.f32 %v3294_v48  ;;  %v3908_v38 = vld [vmem:[#allocation97_spill] sm:$0xff] }
 0x2a7   :  { %2354 = vrcp.f32 %v1625_v47  ;;  %v3909_v47 = vld [vmem:[#allocation98_spill] sm:$0xff] }
 0x2a8   :  { %2356 = vtanh.f32 %v3296_v26 }
 0x2a9   :  { %2358 = vrcp.f32 %v1626_v49  ;;  %v3910_v49 = vld [vmem:[#allocation99_spill] sm:$0xff] }
 0x2b0   :  { %v2353_v57 = vpop.eup %2352 }
 0x2b1   :  { %v2355_v0 = vpop.eup %2354 }
 0x2b2   :  { %v2357_v62 = vpop.eup %2356  ;;  %v1639_v37 = vmul.f32 %v2355_v0, %v2353_v57  ;;  %v3911_v57 = vld [vmem:[#allocation100_spill] sm:$0xff]  ;;  %v3912_v0 = vld [vmem:[#allocation101_spill] sm:$0xff] }
 0x2b3   :  { %v2359_v17 = vpop.eup %2358 }
 0x2b4   :  { %v1640_v39 = vmul.f32 %v2359_v17, %v2357_v62  ;;  %v3300_v30 = vpack.c.bf16 %v1639_v37, %v1639_v37  ;;  %v3913_v62 = vld [vmem:[#allocation102_spill] sm:$0xff]  ;;  %v3914_v17 = vld [vmem:[#allocation103_spill] sm:$0xff]  ;;  %v3915_v37 = vld [vmem:[#allocation104_spill] sm:$0xff] }
 0x2b6   :  { %v1642_v45 = vpack.c.bf16 %v1640_v39, %v1640_v39  ;;  %v3916_v39 = vld [vmem:[#allocation105_spill] sm:$0xff] }
 0x2b8   :  { %1675 = vmatprep.mubr.bf16.mxu0 %v1642_v45  ;;  %1716 = vmatprep.mubr.bf16.mxu1 %v1642_v45 }
 0x2b9   :  { %1676 = vmatmul.mubr.bf16.vlgmr.msra.gmra.mrb[24].mxu0 %v3300_v30  ;;  %1717 = vmatmul.mubr.bf16.vlgmr.msra.gmra.mrb[24].mxu1 %v3300_v30 }
 0x2ba   :  { %1726 = vmatpush1.bf16.msra.mxu0 %v3896_v63  ;;  %1767 = vmatpush1.bf16.msra.mxu1 %v3897_v29 }
 0x2bb   :  { %1757 = vmatprep.mubr.bf16.mxu0 %v1642_v45  ;;  %1798 = vmatprep.mubr.bf16.mxu1 %v1642_v45  ;;  %v3917_v45 = vld [vmem:[#allocation106_spill] sm:$0xff] }
 0x2bc   :  { %1727 = vmatprep.subr.bf16.mxu0 %v3898_v56  ;;  %1768 = vmatprep.subr.bf16.mxu1 %v3899_v34 }
 0x2be   :  { %1728 = vmatpush1.bf16.msra.mxu0 %v3900_v20  ;;  %1769 = vmatpush1.bf16.msra.mxu1 %v3901_v42 }
 0x2bf   :  { %1729 = vmatprep.subr.bf16.mxu0 %v3902_v46  ;;  %1770 = vmatprep.subr.bf16.mxu1 %v3903_v2 }
 0x2c2   :  { %1730 = vmatpush1.bf16.msra.mxu0 %v3904_v25  ;;  %1771 = vmatpush1.bf16.msra.mxu1 %v3905_v33 }
 0x2c3   :  { %1731 = vmatprep.subr.bf16.mxu0 %v3906_v16  ;;  %1772 = vmatprep.subr.bf16.mxu1 %v3907_v35  ;;  %v3918_v35 = vld [vmem:[#allocation107_spill] sm:$0xff] }
 0x2c6   :  { %1732 = vmatpush1.bf16.msra.mxu0 %v3908_v38  ;;  %1773 = vmatpush1.bf16.msra.mxu1 %v3909_v47  ;;  %v3919_v38 = vld [vmem:[#allocation108_spill] sm:$0xff]  ;;  %v3920_v47 = vld [vmem:[#allocation109_spill] sm:$0xff] }
 0x2c7   :  { %1733 = vmatprep.subr.bf16.mxu0 %v3910_v49  ;;  %1774 = vmatprep.subr.bf16.mxu1 %v3911_v57  ;;  %v3921_v49 = vld [vmem:[#allocation110_spill] sm:$0xff]  ;;  %v3922_v57 = vld [vmem:[#allocation111_spill] sm:$0xff] }
 0x2ca   :  { %1734 = vmatpush1.bf16.msra.mxu0 %v3912_v0  ;;  %1775 = vmatpush1.bf16.msra.mxu1 %v3913_v62  ;;  %v3923_v0 = vld [vmem:[#allocation112_spill] sm:$0xff]  ;;  %v3924_v62 = vld [vmem:[#allocation113_spill] sm:$0xff] }
 0x2cb   :  { %1735 = vmatprep.subr.bf16.mxu0 %v3914_v17  ;;  %1776 = vmatprep.subr.bf16.mxu1 %v3915_v37  ;;  %v3925_v17 = vld [vmem:[#allocation114_spill] sm:$0xff]  ;;  %v3926_v37 = vld [vmem:[#allocation115_spill] sm:$0xff] }
 0x2ce   :  { %1736 = vmatpush1.bf16.msra.mxu0 %v3916_v39  ;;  %1777 = vmatpush1.bf16.msra.mxu1 %v3917_v45  ;;  %v3927_v39 = vld [vmem:[#allocation116_spill] sm:$0xff]  ;;  %v3928_v45 = vld [vmem:[#allocation117_spill] sm:$0xff] }
 0x2cf   :  { %1737 = vmatprep.subr.bf16.mxu0 %v3918_v35  ;;  %1778 = vmatprep.subr.bf16.mxu1 %v3919_v38  ;;  %v3929_v35 = vld [vmem:[#allocation118_spill] sm:$0xff]  ;;  %v3930_v38 = vld [vmem:[#allocation119_spill] sm:$0xff] }
 0x2d2   :  { %1738 = vmatpush1.bf16.msra.mxu0 %v3920_v47  ;;  %1779 = vmatpush1.bf16.msra.mxu1 %v3921_v49  ;;  %v3931_v47 = vld [vmem:[#allocation120_spill] sm:$0xff]  ;;  %v3932_v49 = vld [vmem:[#allocation121_spill] sm:$0xff] }
 0x2d3   :  { %1739 = vmatprep.subr.bf16.mxu0 %v3922_v57  ;;  %1780 = vmatprep.subr.bf16.mxu1 %v3923_v0  ;;  %v3933_v57 = vld [vmem:[#allocation122_spill] sm:$0xff]  ;;  %v3934_v0 = vld [vmem:[#allocation123_spill] sm:$0xff] }
 0x2d6   :  { %1740 = vmatpush1.bf16.msra.mxu0 %v3924_v62  ;;  %1781 = vmatpush1.bf16.msra.mxu1 %v3925_v17  ;;  %v3935_v62 = vld [vmem:[#allocation124_spill] sm:$0xff]  ;;  %v3936_v17 = vld [vmem:[#allocation125_spill] sm:$0xff] }
 0x2d7   :  { %1741 = vmatprep.subr.bf16.mxu0 %v3926_v37  ;;  %1782 = vmatprep.subr.bf16.mxu1 %v3927_v39  ;;  %v3937_v37 = vld [vmem:[#allocation126_spill] sm:$0xff]  ;;  %v3938_v39 = vld [vmem:[#allocation127_spill] sm:$0xff] }
 0x2da   :  { %1742 = vmatpush1.bf16.msra.mxu0 %v3928_v45  ;;  %1783 = vmatpush1.bf16.msra.mxu1 %v3929_v35  ;;  %v3939_v45 = vld [vmem:[#allocation128_spill] sm:$0xff]  ;;  %v3940_v35 = vld [vmem:[#allocation129_spill] sm:$0xff] }
 0x2db   :  { %1743 = vmatprep.subr.bf16.mxu0 %v3930_v38  ;;  %1784 = vmatprep.subr.bf16.mxu1 %v3931_v47  ;;  %v3941_v38 = vld [vmem:[#allocation130_spill] sm:$0xff]  ;;  %v3942_v47 = vld [vmem:[#allocation131_spill] sm:$0xff] }
 0x2de   :  { %1744 = vmatpush1.bf16.msra.mxu0 %v3932_v49  ;;  %1785 = vmatpush1.bf16.msra.mxu1 %v3933_v57  ;;  %v3943_v49 = vld [vmem:[#allocation132_spill] sm:$0xff] }
 0x2df   :  { %1745 = vmatprep.subr.bf16.mxu0 %v3934_v0  ;;  %1786 = vmatprep.subr.bf16.mxu1 %v3935_v62 }
 0x2e2   :  { %1746 = vmatpush1.bf16.msra.mxu0 %v3936_v17  ;;  %1787 = vmatpush1.bf16.msra.mxu1 %v3937_v37  ;;  %v3944_v17 = vld [vmem:[#allocation133_spill] sm:$0xff]  ;;  %v3945_v37 = vld [vmem:[#allocation134_spill] sm:$0xff] }
 0x2e3   :  { %1747 = vmatprep.subr.bf16.mxu0 %v3938_v39  ;;  %1788 = vmatprep.subr.bf16.mxu1 %v3939_v45 }
 0x2e6   :  { %1748 = vmatpush1.bf16.msra.mxu0 %v3940_v35  ;;  %1789 = vmatpush1.bf16.msra.mxu1 %v3941_v38 }
 0x2e7   :  { %1749 = vmatprep.subr.bf16.mxu0 %v3942_v47  ;;  %1790 = vmatprep.subr.bf16.mxu1 %v3943_v49 }
 0x2ea   :  { %1750 = vmatpush1.bf16.msra.mxu0 %v3160_v32  ;;  %1791 = vmatpush1.bf16.msra.mxu1 %v3162_v11 }
 0x2eb   :  { %1751 = vmatprep.subr.bf16.mxu0 %v3166_v24  ;;  %1792 = vmatprep.subr.bf16.mxu1 %v3944_v17 }
 0x2ee   :  { %1752 = vmatpush1.bf16.msra.mxu0 %v3945_v37  ;;  %1793 = vmatpush1.bf16.msra.mxu1 %v3174_v9 }
 0x2ef   :  { %1753 = vmatprep.subr.bf16.mxu0 %v3178_v28  ;;  %1794 = vmatprep.subr.bf16.mxu1 %v3180_v54 }
 0x2f2   :  { %1754 = vmatpush1.bf16.msra.mxu0 %v3184_v8  ;;  %1795 = vmatpush1.bf16.msra.mxu1 %v3186_v40 }
 0x2f3   :  { %1755 = vmatprep.subr.bf16.mxu0 %v3190_v55  ;;  %1796 = vmatprep.subr.bf16.mxu1 %v3192_v36 }
 0x2f6   :  { %1756 = vmatpush1.bf16.msra.mxu0 %v3196_v18  ;;  %1797 = vmatpush1.bf16.msra.mxu1 %v3198_v10 }
 0x2f7   :  { %1865 = vmatprep.subr.bf16.mxu0 %v2721_v43  ;;  %1906 = vmatprep.subr.bf16.mxu1 %v2724_v44  ;;  %v3946_v43 = vld [vmem:[#allocation17_spill] sm:$0xff]  ;;  %v3947_v44 = vld [vmem:[#allocation18_spill] sm:$0xff] }
 0x2f9   :  { %1758 = vmatmul.mubr.bf16.vlgmr.msra.gmra.mrb[28].mxu0 %v3300_v30  ;;  %1799 = vmatmul.mubr.bf16.vlgmr.msra.gmra.mrb[28].mxu1 %v3300_v30  ;;  %v3972_v30 = vld [vmem:[#allocation43_spill] sm:$0xff] }
 0x2fa   :  { %1866 = vmatpush1.bf16.msra.mxu0 %v2732_v50  ;;  %1907 = vmatpush1.bf16.msra.mxu1 %v2734_v51  ;;  %v3948_v50 = vld [vmem:[#allocation19_spill] sm:$0xff]  ;;  %v3949_v51 = vld [vmem:[#allocation22_spill] sm:$0xff] }
 0x2fb   :  { %1867 = vmatprep.subr.bf16.mxu0 %v2736_v52  ;;  %1908 = vmatprep.subr.bf16.mxu1 %v2738_v53  ;;  %v3950_v52 = vld [vmem:[#allocation20_spill] sm:$0xff]  ;;  %v3951_v53 = vld [vmem:[#allocation21_spill] sm:$0xff] }
 0x2fe   :  { %1868 = vmatpush1.bf16.msra.mxu0 %v2743_v58  ;;  %1909 = vmatpush1.bf16.msra.mxu1 %v2747_v59  ;;  %v3952_v58 = vld [vmem:[#allocation23_spill] sm:$0xff]  ;;  %v3953_v59 = vld [vmem:[#allocation26_spill] sm:$0xff] }
 0x2ff   :  { %1869 = vmatprep.subr.bf16.mxu0 %v2749_v60  ;;  %1910 = vmatprep.subr.bf16.mxu1 %v2752_v61  ;;  %v3954_v60 = vld [vmem:[#allocation24_spill] sm:$0xff]  ;;  %v3955_v61 = vld [vmem:[#allocation25_spill] sm:$0xff] }
 0x302   :  { %1870 = vmatpush1.bf16.msra.mxu0 %v2757_v3  ;;  %1911 = vmatpush1.bf16.msra.mxu1 %v2761_v4  ;;  %v3956_v3 = vld [vmem:[#allocation27_spill] sm:$0xff]  ;;  %v3957_v4 = vld [vmem:[#allocation30_spill] sm:$0xff] }
 0x303   :  { %1871 = vmatprep.subr.bf16.mxu0 %v2763_v5  ;;  %1912 = vmatprep.subr.bf16.mxu1 %v2766_v6  ;;  %v3958_v5 = vld [vmem:[#allocation28_spill] sm:$0xff]  ;;  %v3959_v6 = vld [vmem:[#allocation29_spill] sm:$0xff] }
 0x306   :  { %1872 = vmatpush1.bf16.msra.mxu0 %v2770_v1  ;;  %1913 = vmatpush1.bf16.msra.mxu1 %v2775_v7  ;;  %v3960_v1 = vld [vmem:[#allocation31_spill] sm:$0xff]  ;;  %v3961_v7 = vld [vmem:[#allocation34_spill] sm:$0xff] }
 0x307   :  { %1873 = vmatprep.subr.bf16.mxu0 %v2782_v13  ;;  %1914 = vmatprep.subr.bf16.mxu1 %v2786_v15  ;;  %v3963_v13 = vld [vmem:[#allocation33_spill] sm:$0xff]  ;;  %v3965_v15 = vld [vmem:[#allocation38_spill] sm:$0xff] }
 0x30a   :  { %1874 = vmatpush1.bf16.msra.mxu0 %v2780_v12  ;;  %1915 = vmatpush1.bf16.msra.mxu1 %v2784_v14  ;;  %v3962_v12 = vld [vmem:[#allocation32_spill] sm:$0xff]  ;;  %v3964_v14 = vld [vmem:[#allocation35_spill] sm:$0xff] }
 0x30b   :  { %1875 = vmatprep.subr.bf16.mxu0 %v2790_v19  ;;  %1916 = vmatprep.subr.bf16.mxu1 %v2798_v23  ;;  %v3966_v19 = vld [vmem:[#allocation36_spill] sm:$0xff]  ;;  %v3969_v23 = vld [vmem:[#allocation42_spill] sm:$0xff] }
 0x30e   :  { %1876 = vmatpush1.bf16.msra.mxu0 %v2794_v21  ;;  %1917 = vmatpush1.bf16.msra.mxu1 %v2796_v22  ;;  %v3967_v21 = vld [vmem:[#allocation37_spill] sm:$0xff]  ;;  %v3968_v22 = vld [vmem:[#allocation39_spill] sm:$0xff] }
 0x30f   :  { %1877 = vmatprep.subr.bf16.mxu0 %v2802_v27  ;;  %1918 = vmatprep.subr.bf16.mxu1 %v2811_v31  ;;  %v3970_v27 = vld [vmem:[#allocation40_spill] sm:$0xff]  ;;  %v3971_v31 = vld [vmem:[#allocation41_spill] sm:$0xff] }
 0x312   :  { %1878 = vmatpush1.bf16.msra.mxu0 %v3946_v43  ;;  %1919 = vmatpush1.bf16.msra.mxu1 %v3947_v44  ;;  %v3973_v43 = vld [vmem:[#allocation46_spill] sm:$0xff]  ;;  %v3974_v44 = vld [vmem:[#allocation44_spill] sm:$0xff] }
 0x313   :  { %1879 = vmatprep.subr.bf16.mxu0 %v3948_v50  ;;  %1920 = vmatprep.subr.bf16.mxu1 %v3949_v51  ;;  %v3975_v50 = vld [vmem:[#allocation45_spill] sm:$0xff]  ;;  %v3976_v51 = vld [vmem:[#allocation47_spill] sm:$0xff] }
 0x316   :  { %1880 = vmatpush1.bf16.msra.mxu0 %v3950_v52  ;;  %1921 = vmatpush1.bf16.msra.mxu1 %v3951_v53  ;;  %v3977_v52 = vld [vmem:[#allocation48_spill] sm:$0xff]  ;;  %v3978_v53 = vld [vmem:[#allocation49_spill] sm:$0xff] }
 0x317   :  { %1881 = vmatprep.subr.bf16.mxu0 %v3952_v58  ;;  %1922 = vmatprep.subr.bf16.mxu1 %v3953_v59  ;;  %v3979_v58 = vld [vmem:[#allocation50_spill] sm:$0xff]  ;;  %v3980_v59 = vld [vmem:[#allocation51_spill] sm:$0xff] }
 0x31a   :  { %1882 = vmatpush1.bf16.msra.mxu0 %v3954_v60  ;;  %1923 = vmatpush1.bf16.msra.mxu1 %v3955_v61  ;;  %v3981_v60 = vld [vmem:[#allocation52_spill] sm:$0xff]  ;;  %v3982_v61 = vld [vmem:[#allocation53_spill] sm:$0xff] }
 0x31b   :  { %1883 = vmatprep.subr.bf16.mxu0 %v3956_v3  ;;  %1924 = vmatprep.subr.bf16.mxu1 %v3957_v4  ;;  %v3983_v3 = vld [vmem:[#allocation54_spill] sm:$0xff]  ;;  %v3984_v4 = vld [vmem:[#allocation55_spill] sm:$0xff] }
 0x31e   :  { %1884 = vmatpush1.bf16.msra.mxu0 %v3958_v5  ;;  %1925 = vmatpush1.bf16.msra.mxu1 %v3959_v6  ;;  %v3985_v5 = vld [vmem:[#allocation58_spill] sm:$0xff] }
 0x31f   :  { %1885 = vmatprep.subr.bf16.mxu0 %v3960_v1  ;;  %1926 = vmatprep.subr.bf16.mxu1 %v3961_v7  ;;  %v2424_v6 = vld [vmem:[#allocation11 + $0x2] ss:$4 sm:$0xff] }
 0x320   :  { %v3986_v1 = vld [vmem:[#allocation59_spill] sm:$0xff] }
 0x321   :  { %v523_v7 = vrot.slane %v2424_v6, %v3986_v1 }
 0x322   :  { %1886 = vmatpush1.bf16.msra.mxu0 %v3962_v12  ;;  %1927 = vmatpush1.bf16.msra.mxu1 %v3963_v13  ;;  %v3987_v12 = vld [vmem:[#allocation60_spill] sm:$0xff] }
 0x323   :  { %1887 = vmatprep.subr.bf16.mxu0 %v3964_v14  ;;  %1928 = vmatprep.subr.bf16.mxu1 %v3965_v15  ;;  %v527_v13 = vrot.slane %v2424_v6, %v3987_v12  ;;  %v3988_v14 = vld [vmem:[#allocation63_spill] sm:$0xff] }
 0x324   :  { %v560_v15 = vadd.f32 %v523_v7, %v3988_v14 }
 0x326   :  { %1888 = vmatpush1.bf16.msra.mxu0 %v3966_v19  ;;  %1929 = vmatpush1.bf16.msra.mxu1 %v3967_v21  ;;  %v3989_v19 = vld [vmem:[#allocation64_spill] sm:$0xff] }
 0x327   :  { %1889 = vmatprep.subr.bf16.mxu0 %v3968_v22  ;;  %1930 = vmatprep.subr.bf16.mxu1 %v3969_v23  ;;  %v561_v21 = vadd.f32 %v527_v13, %v3989_v19  ;;  %v3992_v19 = vld [vmem:[#allocation65_spill] sm:$0xff] }
 0x32a   :  { %1890 = vmatpush1.bf16.msra.mxu0 %v3970_v27  ;;  %1931 = vmatpush1.bf16.msra.mxu1 %v3971_v31  ;;  %v3990_v31 = vld [vmem:[#allocation66_spill] sm:$0xff] }
 0x32b   :  { %1891 = vmatprep.subr.bf16.mxu0 %v3972_v30  ;;  %1932 = vmatprep.subr.bf16.mxu1 %v3973_v43 }
 0x32e   :  { %1892 = vmatpush1.bf16.msra.mxu0 %v3974_v44  ;;  %1933 = vmatpush1.bf16.msra.mxu1 %v3975_v50 }
 0x32f   :  { %1893 = vmatprep.subr.bf16.mxu0 %v3976_v51  ;;  %1934 = vmatprep.subr.bf16.mxu1 %v3977_v52  ;;  %v3991_v51 = vld [vmem:[#allocation70_spill] sm:$0xff] }
 0x332   :  { %1894 = vmatpush1.bf16.msra.mxu0 %v3978_v53  ;;  %1935 = vmatpush1.bf16.msra.mxu1 %v3979_v58 }
 0x333   :  { %1895 = vmatprep.subr.bf16.mxu0 %v3980_v59  ;;  %1936 = vmatprep.subr.bf16.mxu1 %v3981_v60 }
 0x336   :  { %1896 = vmatpush1.bf16.msra.mxu0 %v3982_v61  ;;  %1937 = vmatpush1.bf16.msra.mxu1 %v3983_v3 }
 0x337   :  { %1947 = vmatprep.subr.bf16.mxu0 %v3984_v4  ;;  %1988 = vmatprep.subr.bf16.mxu1 %v3985_v5 }
 0x38c   :  { %v1677_v22 = vpop.f32.mrb[24].mxu0  ;;  %v1718_v23 = vpop.f32.mrb[24].mxu1 }
 0x38d   :  { %v1807_v27 = vadd.f32 %v1677_v22, %v560_v15  ;;  %v1809_v30 = vadd.f32 %v1718_v23, %v3990_v31  ;;  %v1679_v43 = vpop.f32.mrb[25].mxu0  ;;  %v1720_v44 = vpop.f32.mrb[25].mxu1  ;;  %v3993_v22 = vld [vmem:[#allocation68_spill] sm:$0xff] }
 0x38e   :  { %v1808_v50 = vadd.f32 %v1679_v43, %v561_v21  ;;  %v1810_v52 = vadd.f32 %v1720_v44, %v3991_v51  ;;  %v1681_v53 = vpop.f32.mrb[26].mxu0  ;;  %v1722_v58 = vpop.f32.mrb[26].mxu1  ;;  %v539_v21 = vrot.slane %v2424_v6, %v3992_v19  ;;  %v547_v23 = vrot.slane %v2424_v6, %v3993_v22  ;;  %v3994_v43 = vld [vmem:[#allocation69_spill] sm:$0xff] }
 0x38f   :  { %v1682_v59 = vpop.f32.mrb[27].mxu0  ;;  %v1723_v60 = vpop.f32.mrb[27].mxu1  ;;  %v2282_v61 = vmul.f32 -1.442695, %v1807_v27  ;;  %v2284_v3 = vmul.f32 -1.442695, %v1809_v30  ;;  %v543_v44 = vrot.slane %v2424_v6, %v3994_v43  ;;  %v551_v27 = vrot.slane %v2424_v6, %v2974_v41 }
 0x390   :  { %v2283_v4 = vmul.f32 -1.442695, %v1808_v50  ;;  %v2285_v5 = vmul.f32 -1.442695, %v1810_v52  ;;  %v3995_v52 = vld [vmem:[#allocation77_spill] sm:$0xff]  ;;  %v3996_v58 = vld [vmem:[#allocation78_spill] sm:$0xff] }
 0x391   :  { %2360 = vpow2.f32 %v2282_v61  ;;  %v564_v53 = vadd.f32 %v539_v21, %v3995_v52  ;;  %v566_v59 = vadd.f32 %v547_v23, %v3996_v58  ;;  %v3997_v60 = vld [vmem:[#allocation79_spill] sm:$0xff] }
 0x392   :  { %2362 = vpow2.f32 %v2284_v3  ;;  %v565_v61 = vadd.f32 %v543_v44, %v3997_v60  ;;  %v3998_v3 = vld [vmem:[#allocation80_spill] sm:$0xff] }
 0x393   :  { %2364 = vpow2.f32 %v2283_v4  ;;  %v567_v4 = vadd.f32 %v551_v27, %v3998_v3 }
 0x394   :  { %2366 = vpow2.f32 %v2285_v5 }
 0x39b   :  { %v2361_v7 = vpop.eup %2360 }
 0x39c   :  { %v2363_v13 = vpop.eup %2362  ;;  %v1821_v31 = vadd.f32 1.0, %v2361_v7 }
 0x39d   :  { %v2365_v14 = vpop.eup %2364  ;;  %v1833_v30 = vadd.f32 1.0, %v2363_v13 }
 0x39e   :  { %v2367_v15 = vpop.eup %2366  ;;  %v1822_v50 = vadd.f32 1.0, %v2365_v14  ;;  %2368 = vrcp.f32 %v1821_v31 }
 0x39f   :  { %v1834_v51 = vadd.f32 1.0, %v2367_v15  ;;  %2370 = vrcp.f32 %v1833_v30 }
 0x3a0   :  { %2372 = vrcp.f32 %v1822_v50 }
 0x3a1   :  { %2374 = vrcp.f32 %v1834_v51 }
 0x3a8   :  { %v2369_v27 = vpop.eup %2368 }
 0x3a9   :  { %v2371_v30 = vpop.eup %2370 }
 0x3aa   :  { %v2373_v50 = vpop.eup %2372  ;;  %v1853_v51 = vmul.f32 %v2371_v30, %v3294_v48  ;;  %v4014_v30 = vld [vmem:[#allocation111_spill] sm:$0xff] }
 0x3cc   :  { %v1759_v5 = vpop.f32.mrb[28].mxu0  ;;  %v1800_v22 = vpop.f32.mrb[28].mxu1 }
 0x3cd   :  { %v1811_v7 = vadd.f32 %v1759_v5, %v564_v53  ;;  %v1813_v43 = vadd.f32 %v1800_v22, %v566_v59  ;;  %v1761_v19 = vpop.f32.mrb[29].mxu0  ;;  %v1802_v6 = vpop.f32.mrb[29].mxu1 }
 0x3ce   :  { %v1812_v13 = vadd.f32 %v1761_v19, %v565_v61  ;;  %v1814_v14 = vadd.f32 %v1802_v6, %v567_v4  ;;  %v1763_v15 = vpop.f32.mrb[30].mxu0  ;;  %v1804_v21 = vpop.f32.mrb[30].mxu1 }
 0x3cf   :  { %2376 = vtanh.f32 %v1811_v7  ;;  %v2286_v23 = vmul.f32 -1.442695, %v1813_v43  ;;  %v1764_v31 = vpop.f32.mrb[31].mxu0  ;;  %v1805_v52 = vpop.f32.mrb[31].mxu1 }
 0x3d0   :  { %2378 = vtanh.f32 %v1812_v13  ;;  %v2287_v44 = vmul.f32 -1.442695, %v1814_v14  ;;  %v2375_v53 = vpop.eup %2374  ;;  %v4010_v31 = vld [vmem:[#allocation107_spill] sm:$0xff]  ;;  %v4011_v52 = vld [vmem:[#allocation108_spill] sm:$0xff] }
 0x3d1   :  { %2380 = vpow2.f32 %v2286_v23  ;;  %v1854_v60 = vmul.f32 %v2375_v53, %v3296_v26  ;;  %v4016_v53 = vld [vmem:[#allocation113_spill] sm:$0xff] }
 0x3d2   :  { %2382 = vpow2.f32 %v2287_v44  ;;  %v4012_v44 = vld [vmem:[#allocation109_spill] sm:$0xff] }
 0x3d9   :  { %v2377_v22 = vpop.eup %2376 }
 0x3da   :  { %v2379_v58 = vpop.eup %2378  ;;  %v1855_v19 = vmul.f32 %v2377_v22, %v2369_v27  ;;  %v4013_v27 = vld [vmem:[#allocation110_spill] sm:$0xff] }
 0x3db   :  { %v2381_v59 = vpop.eup %2380  ;;  %v1856_v61 = vmul.f32 %v2379_v58, %v2373_v50  ;;  %v4015_v50 = vld [vmem:[#allocation112_spill] sm:$0xff]  ;;  %v4017_v22 = vld [vmem:[#allocation114_spill] sm:$0xff]  ;;  %v4018_v58 = vld [vmem:[#allocation115_spill] sm:$0xff] }
 0x3dc   :  { %v2383_v43 = vpop.eup %2382  ;;  %v3450_v3 = vadd.f32 %v1855_v19, %v1853_v51  ;;  %v1847_v4 = vadd.f32 1.0, %v2381_v59  ;;  %v4019_v51 = vld [vmem:[#allocation116_spill] sm:$0xff]  ;;  %v4020_v19 = vld [vmem:[#allocation117_spill] sm:$0xff]  ;;  %v4021_v59 = vld [vmem:[#allocation118_spill] sm:$0xff] }
 0x3dd   :  { %v3452_v5 = vadd.f32 %v1856_v61, %v1854_v60  ;;  %v1848_v7 = vadd.f32 1.0, %v2383_v43  ;;  %v4022_v60 = vld [vmem:[#allocation119_spill] sm:$0xff]  ;;  %v4023_v61 = vld [vmem:[#allocation120_spill] sm:$0xff]  ;;  %v4024_v43 = vld [vmem:[#allocation121_spill] sm:$0xff] }
 0x3de   :  { %2384 = vtanh.f32 %v3450_v3 }
 0x3df   :  { %2386 = vrcp.f32 %v1847_v4  ;;  %v4025_v4 = vld [vmem:[#allocation125_spill] sm:$0xff] }
 0x3e0   :  { %2388 = vtanh.f32 %v3452_v5 }
 0x3e1   :  { %2390 = vrcp.f32 %v1848_v7  ;;  %v4026_v7 = vld [vmem:[#allocation126_spill] sm:$0xff] }
 0x3e8   :  { %v2385_v6 = vpop.eup %2384 }
 0x3e9   :  { %v2387_v48 = vpop.eup %2386 }
 0x3ea   :  { %v2389_v13 = vpop.eup %2388  ;;  %v1861_v15 = vmul.f32 %v2387_v48, %v2385_v6 }
 0x3eb   :  { %v2391_v14 = vpop.eup %2390 }
 0x3ec   :  { %v1862_v26 = vmul.f32 %v2391_v14, %v2389_v13  ;;  %v3456_v23 = vpack.c.bf16 %v1861_v15, %v1861_v15 }
 0x3ee   :  { %v1864_v21 = vpack.c.bf16 %v1862_v26, %v1862_v26 }
 0x3f0   :  { %1897 = vmatprep.mubr.bf16.mxu0 %v1864_v21  ;;  %1938 = vmatprep.mubr.bf16.mxu1 %v1864_v21 }
 0x3f1   :  { %1898 = vmatmul.mubr.bf16.vlgmr.msra.gmra.mrb[32].mxu0 %v3456_v23  ;;  %1939 = vmatmul.mubr.bf16.vlgmr.msra.gmra.mrb[32].mxu1 %v3456_v23 }
 0x3f2   :  { %1948 = vmatpush1.bf16.msra.mxu0 %v3896_v63  ;;  %1989 = vmatpush1.bf16.msra.mxu1 %v3897_v29  ;;  %v3999_v63 = vld [vmem:[#allocation96_spill] sm:$0xff]  ;;  %v4000_v29 = vld [vmem:[#allocation97_spill] sm:$0xff] }
 0x3f3   :  { %1979 = vmatprep.mubr.bf16.mxu0 %v1864_v21  ;;  %2020 = vmatprep.mubr.bf16.mxu1 %v1864_v21  ;;  %v4031_v21 = vld [vmem:[#allocation65_spill] sm:$0xff] }
 0x3f4   :  { %1949 = vmatprep.subr.bf16.mxu0 %v3898_v56  ;;  %1990 = vmatprep.subr.bf16.mxu1 %v3899_v34  ;;  %v4001_v56 = vld [vmem:[#allocation98_spill] sm:$0xff]  ;;  %v4002_v34 = vld [vmem:[#allocation99_spill] sm:$0xff] }
 0x3f6   :  { %1950 = vmatpush1.bf16.msra.mxu0 %v3900_v20  ;;  %1991 = vmatpush1.bf16.msra.mxu1 %v3901_v42  ;;  %v4003_v20 = vld [vmem:[#allocation100_spill] sm:$0xff]  ;;  %v4004_v42 = vld [vmem:[#allocation101_spill] sm:$0xff] }
 0x3f7   :  { %1951 = vmatprep.subr.bf16.mxu0 %v3902_v46  ;;  %1992 = vmatprep.subr.bf16.mxu1 %v3903_v2  ;;  %v4005_v46 = vld [vmem:[#allocation102_spill] sm:$0xff]  ;;  %v4006_v2 = vld [vmem:[#allocation103_spill] sm:$0xff] }
 0x3fa   :  { %1952 = vmatpush1.bf16.msra.mxu0 %v3904_v25  ;;  %1993 = vmatpush1.bf16.msra.mxu1 %v3905_v33  ;;  %v4007_v25 = vld [vmem:[#allocation104_spill] sm:$0xff]  ;;  %v4008_v33 = vld [vmem:[#allocation105_spill] sm:$0xff] }
 0x3fb   :  { %1953 = vmatprep.subr.bf16.mxu0 %v3906_v16  ;;  %1994 = vmatprep.subr.bf16.mxu1 %v3999_v63  ;;  %v4009_v16 = vld [vmem:[#allocation106_spill] sm:$0xff]  ;;  %v4032_v63 = vld [vmem:[#allocation68_spill] sm:$0xff] }
 0x3fe   :  { %1954 = vmatpush1.bf16.msra.mxu0 %v4000_v29  ;;  %1995 = vmatpush1.bf16.msra.mxu1 %v4001_v56 }
 0x3ff   :  { %1955 = vmatprep.subr.bf16.mxu0 %v4002_v34  ;;  %1996 = vmatprep.subr.bf16.mxu1 %v4003_v20  ;;  %v4033_v34 = vld [vmem:[#allocation69_spill] sm:$0xff] }
 0x402   :  { %1956 = vmatpush1.bf16.msra.mxu0 %v4004_v42  ;;  %1997 = vmatpush1.bf16.msra.mxu1 %v4005_v46 }
 0x403   :  { %1957 = vmatprep.subr.bf16.mxu0 %v4006_v2  ;;  %1998 = vmatprep.subr.bf16.mxu1 %v4007_v25 }
 0x406   :  { %1958 = vmatpush1.bf16.msra.mxu0 %v4008_v33  ;;  %1999 = vmatpush1.bf16.msra.mxu1 %v4009_v16  ;;  %v4034_v33 = vld [vmem:[#allocation81_spill] sm:$0xff] }
 0x407   :  { %1959 = vmatprep.subr.bf16.mxu0 %v4010_v31  ;;  %2000 = vmatprep.subr.bf16.mxu1 %v4011_v52  ;;  %v4035_v31 = vld [vmem:[#allocation82_spill] sm:$0xff] }
 0x40a   :  { %1960 = vmatpush1.bf16.msra.mxu0 %v4012_v44  ;;  %2001 = vmatpush1.bf16.msra.mxu1 %v4013_v27  ;;  %v4036_v44 = vld [vmem:[#allocation83_spill] sm:$0xff] }
 0x40b   :  { %1961 = vmatprep.subr.bf16.mxu0 %v4014_v30  ;;  %2002 = vmatprep.subr.bf16.mxu1 %v4015_v50  ;;  %v4037_v30 = vld [vmem:[#allocation84_spill] sm:$0xff] }
 0x40e   :  { %1962 = vmatpush1.bf16.msra.mxu0 %v4016_v53  ;;  %2003 = vmatpush1.bf16.msra.mxu1 %v4017_v22 }
 0x40f   :  { %1963 = vmatprep.subr.bf16.mxu0 %v4018_v58  ;;  %2004 = vmatprep.subr.bf16.mxu1 %v4019_v51 }
 0x412   :  { %1964 = vmatpush1.bf16.msra.mxu0 %v4020_v19  ;;  %2005 = vmatpush1.bf16.msra.mxu1 %v4021_v59 }
 0x413   :  { %1965 = vmatprep.subr.bf16.mxu0 %v4022_v60  ;;  %2006 = vmatprep.subr.bf16.mxu1 %v4023_v61 }
 0x416   :  { %1966 = vmatpush1.bf16.msra.mxu0 %v4024_v43  ;;  %2007 = vmatpush1.bf16.msra.mxu1 %v3933_v57 }
 0x417   :  { %1967 = vmatprep.subr.bf16.mxu0 %v3934_v0  ;;  %2008 = vmatprep.subr.bf16.mxu1 %v3935_v62 }
 0x41a   :  { %1968 = vmatpush1.bf16.msra.mxu0 %v4025_v4  ;;  %2009 = vmatpush1.bf16.msra.mxu1 %v4026_v7 }
 0x41b   :  { %1969 = vmatprep.subr.bf16.mxu0 %v3938_v39  ;;  %2010 = vmatprep.subr.bf16.mxu1 %v3939_v45 }
 0x41e   :  { %1970 = vmatpush1.bf16.msra.mxu0 %v3940_v35  ;;  %2011 = vmatpush1.bf16.msra.mxu1 %v3941_v38  ;;  %v4029_v35 = vld [vmem:[#allocation72_spill] sm:$0xff] }
 0x41f   :  { %1971 = vmatprep.subr.bf16.mxu0 %v3942_v47  ;;  %2012 = vmatprep.subr.bf16.mxu1 %v3943_v49  ;;  %v4030_v49 = vld [vmem:[#allocation73_spill] sm:$0xff] }
 0x422   :  { %1972 = vmatpush1.bf16.msra.mxu0 %v3160_v32  ;;  %2013 = vmatpush1.bf16.msra.mxu1 %v3162_v11  ;;  %v2425_v32 = vld [vmem:[#allocation11 + $0x3] ss:$4 sm:$0xff] }
 0x423   :  { %1973 = vmatprep.subr.bf16.mxu0 %v3166_v24  ;;  %2014 = vmatprep.subr.bf16.mxu1 %v3944_v17  ;;  %v574_v11 = vrot.slane %v2425_v32, %v3986_v1  ;;  %v578_v24 = vrot.slane %v2425_v32, %v3987_v12  ;;  %v598_v29 = vrot.slane %v2425_v32, %v4032_v63 }
 0x424   :  { %v594_v20 = vrot.slane %v2425_v32, %v4033_v34  ;;  %v602_v42 = vrot.slane %v2425_v32, %v2974_v41 }
 0x425   :  { %v617_v52 = vadd.f32 %v598_v29, %v4035_v31 }
 0x426   :  { %1974 = vmatpush1.bf16.msra.mxu0 %v3945_v37  ;;  %2015 = vmatpush1.bf16.msra.mxu1 %v3174_v9  ;;  %v4027_v9 = vld [vmem:[#allocation67_spill] sm:$0xff]  ;;  %v616_v27 = vadd.f32 %v594_v20, %v4036_v44  ;;  %v618_v50 = vadd.f32 %v602_v42, %v4037_v30 }
 0x427   :  { %1975 = vmatprep.subr.bf16.mxu0 %v3178_v28  ;;  %2016 = vmatprep.subr.bf16.mxu1 %v3180_v54  ;;  %v611_v28 = vadd.f32 %v574_v11, %v4027_v9  ;;  %v4028_v54 = vld [vmem:[#allocation71_spill] sm:$0xff] }
 0x42a   :  { %1976 = vmatpush1.bf16.msra.mxu0 %v3184_v8  ;;  %2017 = vmatpush1.bf16.msra.mxu1 %v3186_v40  ;;  %v612_v8 = vadd.f32 %v578_v24, %v4028_v54 }
 0x42b   :  { %1977 = vmatprep.subr.bf16.mxu0 %v3190_v55  ;;  %2018 = vmatprep.subr.bf16.mxu1 %v3192_v36 }
 0x42e   :  { %1978 = vmatpush1.bf16.msra.mxu0 %v3196_v18  ;;  %2019 = vmatpush1.bf16.msra.mxu1 %v3198_v10 }
 0x431   :  { %1980 = vmatmul.mubr.bf16.vlgmr.msra.gmra.mrb[36].mxu0 %v3456_v23  ;;  %2021 = vmatmul.mubr.bf16.vlgmr.msra.gmra.mrb[36].mxu1 %v3456_v23  ;;  %v590_v23 = vrot.slane %v2425_v32, %v4031_v21 }
 0x433   :  { %v615_v16 = vadd.f32 %v590_v23, %v4034_v33 }
 0x4c4   :  { %v1899_v40 = vpop.f32.mrb[32].mxu0  ;;  %v1940_v55 = vpop.f32.mrb[32].mxu1 }
 0x4c5   :  { %v2029_v36 = vadd.f32 %v1899_v40, %v611_v28  ;;  %v2031_v18 = vadd.f32 %v1940_v55, %v4029_v35  ;;  %v1901_v38 = vpop.f32.mrb[33].mxu0  ;;  %v1942_v10 = vpop.f32.mrb[33].mxu1 }
 0x4c6   :  { %v2030_v47 = vadd.f32 %v1901_v38, %v612_v8  ;;  %v2032_v57 = vadd.f32 %v1942_v10, %v4030_v49  ;;  %v1903_v0 = vpop.f32.mrb[34].mxu0  ;;  %v1944_v62 = vpop.f32.mrb[34].mxu1 }
 0x4c7   :  { %v1904_v17 = vpop.f32.mrb[35].mxu0  ;;  %v1945_v37 = vpop.f32.mrb[35].mxu1  ;;  %v2288_v39 = vmul.f32 -1.442695, %v2029_v36  ;;  %v2290_v45 = vmul.f32 -1.442695, %v2031_v18 }
 0x4c8   :  { %v2289_v6 = vmul.f32 -1.442695, %v2030_v47  ;;  %v2291_v48 = vmul.f32 -1.442695, %v2032_v57  ;;  %v2085_v62 = vld [vmem:[%s3555_s7] sm:$0x3] }
 0x4c9   :  { %2392 = vpow2.f32 %v2288_v39 }
 0x4ca   :  { %2394 = vpow2.f32 %v2290_v45  ;;  %v2094_v45 = vrot.slane %v2085_v62, %v3987_v12 }
 0x4cb   :  { %2396 = vpow2.f32 %v2289_v6 }
 0x4cc   :  { %2398 = vpow2.f32 %v2291_v48 }
 0x4d3   :  { %v2393_v13 = vpop.eup %2392 }
 0x4d4   :  { %v2395_v14 = vpop.eup %2394  ;;  %v2043_v56 = vadd.f32 1.0, %v2393_v13 }
 0x4d5   :  { %v2397_v15 = vpop.eup %2396  ;;  %v2055_v46 = vadd.f32 1.0, %v2395_v14 }
 0x4d6   :  { %v2399_v26 = vpop.eup %2398  ;;  %v2044_v2 = vadd.f32 1.0, %v2397_v15  ;;  %2400 = vrcp.f32 %v2043_v56 }
 0x4d7   :  { %v2056_v25 = vadd.f32 1.0, %v2399_v26  ;;  %2402 = vrcp.f32 %v2055_v46  ;;  %v2294_v26 = vld [vmem:[#allocation2] ss:$0 sm:$0xff] }
 0x4d8   :  { %2404 = vrcp.f32 %v2044_v2 }
 0x4d9   :  { %2406 = vrcp.f32 %v2056_v25 }
 0x4e0   :  { %v2401_v24 = vpop.eup %2400 }
 0x4e1   :  { %v2403_v9 = vpop.eup %2402 }
 0x4e2   :  { %v2405_v28 = vpop.eup %2404  ;;  %v2075_v55 = vmul.f32 %v2403_v9, %v3450_v3  ;;  %v2090_v3 = vrot.slane %v2085_v62, %v3986_v1 }
 0x4e3   :  { %v2407_v54 = vpop.eup %2406 }
 0x4e4   :  { %v2076_v18 = vmul.f32 %v2407_v54, %v3452_v5 }
 0x504   :  { %v1981_v53 = vpop.f32.mrb[36].mxu0  ;;  %v2022_v22 = vpop.f32.mrb[36].mxu1 }
 0x505   :  { %v2033_v58 = vadd.f32 %v1981_v53, %v615_v16  ;;  %v2035_v51 = vadd.f32 %v2022_v22, %v617_v52  ;;  %v1983_v19 = vpop.f32.mrb[37].mxu0  ;;  %v2024_v41 = vpop.f32.mrb[37].mxu1 }
 0x506   :  { %v2034_v59 = vadd.f32 %v1983_v19, %v616_v27  ;;  %v2036_v60 = vadd.f32 %v2024_v41, %v618_v50  ;;  %v1985_v61 = vpop.f32.mrb[38].mxu0  ;;  %v2026_v43 = vpop.f32.mrb[38].mxu1 }
 0x507   :  { %2408 = vtanh.f32 %v2033_v58  ;;  %v2292_v4 = vmul.f32 -1.442695, %v2035_v51  ;;  %v1986_v7 = vpop.f32.mrb[39].mxu0  ;;  %v2027_v32 = vpop.f32.mrb[39].mxu1 }
 0x508   :  { %2410 = vtanh.f32 %v2034_v59  ;;  %v2293_v11 = vmul.f32 -1.442695, %v2036_v60 }
 0x509   :  { %2412 = vpow2.f32 %v2292_v4 }
 0x50a   :  { %2414 = vpow2.f32 %v2293_v11 }
 0x511   :  { %v2409_v8 = vpop.eup %2408 }
 0x512   :  { %v2411_v40 = vpop.eup %2410  ;;  %v2077_v36 = vmul.f32 %v2409_v8, %v2401_v24 }
 0x513   :  { %v2413_v35 = vpop.eup %2412  ;;  %v2078_v38 = vmul.f32 %v2411_v40, %v2405_v28 }
 0x514   :  { %v2415_v10 = vpop.eup %2414  ;;  %v2079_v47 = vadd.f32 %v2077_v36, %v2075_v55  ;;  %v2069_v49 = vadd.f32 1.0, %v2413_v35 }
 0x515   :  { %v2080_v57 = vadd.f32 %v2078_v38, %v2076_v18  ;;  %v2070_v0 = vadd.f32 1.0, %v2415_v10 }
 0x516   :  { %2416 = vtanh.f32 %v2079_v47 }
 0x517   :  { %2418 = vrcp.f32 %v2069_v49 }
 0x518   :  { %2420 = vtanh.f32 %v2080_v57 }
 0x519   :  { %2422 = vrcp.f32 %v2070_v0 }
 0x520   :  { %v2417_v17 = vpop.eup %2416 }
 0x521   :  { %v2419_v37 = vpop.eup %2418 }
 0x522   :  { %v2421_v39 = vpop.eup %2420  ;;  %v2083_v5 = vmul.f32 %v2419_v37, %v2417_v17 }
 0x523   :  { %v2423_v6 = vpop.eup %2422 }
 0x524   :  { %v2084_v48 = vmul.f32 %v2423_v6, %v2421_v39  ;;  %v2097_v13 = vmul.f32 %v2090_v3, %v2083_v5 }
 0x526   :  { %v2098_v14 = vmul.f32 %v2094_v45, %v2084_v48 }
 0x528   :  { %v2099_v15 = vadd.f32 %v2098_v14, %v2097_v13 }
 0x52a   :  { %2100 = vadd.xlane.f32.xlu0 %v2099_v15 }
 0x5b7   :  { %v2101_v21 = vpop.xlane.xlu0 %2100 }
 0x5b8   :  { %v2109_v23 = vadd.f32 %v2294_v26, %v2101_v21 }
 0x5ba   :  { %2111 = vst.msk [vmem:[%s3557_s9] sm:$0xff] %vm2110_vm1, %v2109_v23 }
 0x5bb   :  { %2116 = vsyncpa [#allocation4], 1 }
 0x5bc   :  { %2117 = vsyncpa [#allocation6], 1 }
 0x5bd   :  { %2118 = vsyncpa [#allocation9], 1 }
 0x5be   :  { %2119 = vsyncpa [#allocation12], 1 }

</bundles_post_ra>
